<compile_context>
chip_gen: v7x
topology: tpu7x:2x2x1
jax: 0.10.0
libtpu: 0.0.40
codegen_flags: <defaults>
</compile_context>

<pallas_src>
import functools
import math

import jax
import jax.numpy as jnp
import numpy as np
from jax.experimental import pallas as pl
from jax.experimental.pallas import tpu as pltpu


# ---------------------------------------------------------------------------
# Architecture constants (fixed by the PyTorch module)
# ---------------------------------------------------------------------------
_HIDDEN = 512
_C1, _C2, _C3 = 32, 64, 64
_ALIGN = 16   # bf16 sublane packing is (16, 128): keep every in-kernel row
              # slice offset / size a multiple of this so no relayout occurs.


def _conv_out(size, k, s):
    return (size - k) // s + 1


def _round_up(x, m):
    return ((x + m - 1) // m) * m


# ---------------------------------------------------------------------------
# Fused Pallas kernel
# ---------------------------------------------------------------------------
def _d3qn_fused_kernel(patches_ref, cw1_ref, cb1_ref,
                       sel2_ref, cw2_ref, cb2_ref,
                       sel3_ref, cw3_ref, cb3_ref,
                       b1_ref, b2_ref,
                       w1_hbm_ref, w2_hbm_ref,
                       q_ref,
                       w1_vmem, w2_vmem, dma_sem,
                       *, n, nb, p3, r2, r3):
    f32, bf16 = jnp.float32, jnp.bfloat16

    # Prefetch the dueling-head weights (the largest operands) HBM -> VMEM
    # while the conv stack runs on operands already resident in VMEM.  With a
    # 1-step grid there is no pipelining, so this hides most of the prologue
    # DMA behind the conv matmuls (largest relative win on v5e).
    w1_cp = pltpu.make_async_copy(w1_hbm_ref, w1_vmem, dma_sem.at[0])
    w2_cp = pltpu.make_async_copy(w2_hbm_ref, w2_vmem, dma_sem.at[1])
    w1_cp.start()
    w2_cp.start()

    # ---- conv1 + ReLU  (the /255 input scaling is pre-folded into cw1) ----
    h = jnp.dot(patches_ref[...], cw1_ref[...], preferred_element_type=f32)
    h = jnp.maximum(h + cb1_ref[...], 0.0).astype(bf16)          # (S1, 32)

    # ---- conv2: one wide one-hot row-gather matmul (K = S1, the full
    #      previous-layer row count), then per-tap (Cin, Cout) weight-block
    #      accumulation.  Per-tap blocks have r2 rows, a multiple of 16, so
    #      every slice below is tile-aligned and no relayout copies / lane
    #      concats are generated.  The 16 tap matmuls are independent and feed
    #      one f32 accumulator (in-place MXU accumulate / MRB on v7x).
    g = jnp.dot(sel2_ref[...], h, preferred_element_type=f32).astype(bf16)   # (16*r2, 32)
    acc = jnp.dot(g[0:r2, :], cw2_ref[pl.ds(0, _C1), :],
                  preferred_element_type=f32)
    for t in range(1, 16):
        acc += jnp.dot(g[t * r2:(t + 1) * r2, :],
                       cw2_ref[pl.ds(t * _C1, _C1), :],
                       preferred_element_type=f32)
    h = jnp.maximum(acc + cb2_ref[...], 0.0).astype(bf16)        # (r2, 64)

    # ---- conv3: same scheme.  Its output rows are laid out
    #      (spatial-position-major, sample-minor) with the sample dimension
    #      padded to nb, so the flatten/head slices below are aligned too.
    g = jnp.dot(sel3_ref[...], h, preferred_element_type=f32).astype(bf16)   # (9*r3, 64)
    acc = jnp.dot(g[0:r3, :], cw3_ref[pl.ds(0, _C2), :],
                  preferred_element_type=f32)
    for t in range(1, 9):
        acc += jnp.dot(g[t * r3:(t + 1) * r3, :],
                       cw3_ref[pl.ds(t * _C2, _C2), :],
                       preferred_element_type=f32)
    h = jnp.maximum(acc + cb3_ref[...], 0.0).astype(bf16)        # (p3*nb, 64)

    # ---- dueling head (both streams fused).  The PyTorch NCHW flatten is
    #      folded into w1cat's row order at pack time; the loop below is a
    #      per-spatial-position accumulation and degenerates to ONE full-array
    #      matmul when p3 == 1 (the demo config) -- no selflat gather pass.
    w1_cp.wait()
    hacc = jnp.dot(h[0:nb, :], w1_vmem[pl.ds(0, _C3), :],
                   preferred_element_type=f32)
    for p in range(1, p3):
        hacc += jnp.dot(h[p * nb:(p + 1) * nb, :],
                        w1_vmem[pl.ds(p * _C3, _C3), :],
                        preferred_element_type=f32)
    hh = jnp.maximum(hacc + b1_ref[...], 0.0).astype(bf16)       # (nb, 1024)

    # Second layer: block-diagonal [V | A] weights with the dueling combine
    # Q = V + A - mean(A) folded in at pack time -> a single MXU pass, no
    # in-kernel lane slicing or cross-lane reduction.
    w2_cp.wait()
    q = jnp.dot(hh, w2_vmem[...], preferred_element_type=f32) + b2_ref[...]  # (nb, A)
    # Rows >= n are padding garbage (never selected upstream); store only the
    # real batch rows.  This is the only sub-(8,128) store in the kernel.
    q_ref[...] = q[0:n, :]


def _full_spec(shape):
    nd = len(shape)
    return pl.BlockSpec(shape, lambda i, _nd=nd: (0,) * _nd)


# ---------------------------------------------------------------------------
# Geometry constants: one-hot gather matrices (host numpy, cached on host so
# no device memory is pinned across batch-size changes).
# ---------------------------------------------------------------------------
@functools.lru_cache(maxsize=None)
def _selector_constants(n, oh1, ow1):
    """One-hot row-gather matrices for conv2 / conv3.

    conv1 output rows : (b, i1, j1) sample-major, count S1 = n*oh1*ow1
    conv2 output rows : (b, i2, j2) sample-major, padded to r2 = round_up(.,16)
    conv3 output rows : (p, b) position-major with the sample dim padded to
                        nb = round_up(n, 16), so per-tap and per-position
                        slices downstream are all 16-row aligned.
    """
    oh2, ow2 = _conv_out(oh1, 4, 2), _conv_out(ow1, 4, 2)
    oh3, ow3 = _conv_out(oh2, 3, 1), _conv_out(ow2, 3, 1)
    p3 = oh3 * ow3
    s1 = n * oh1 * ow1
    r2 = _round_up(n * oh2 * ow2, _ALIGN)
    nb = _round_up(n, _ALIGN)
    r3 = p3 * nb

    sel2 = np.zeros((16 * r2, s1), np.float32)
    for kh in range(4):
        for kw in range(4):
            t = kh * 4 + kw
            for b in range(n):
                for i in range(oh2):
                    for j in range(ow2):
                        orow = b * oh2 * ow2 + i * ow2 + j
                        irow = b * oh1 * ow1 + (2 * i + kh) * ow1 + (2 * j + kw)
                        sel2[t * r2 + orow, irow] = 1.0

    sel3 = np.zeros((9 * r3, r2), np.float32)
    for kh in range(3):
        for kw in range(3):
            t = kh * 3 + kw
            for b in range(n):
                for i in range(oh3):
                    for j in range(ow3):
                        p = i * ow3 + j
                        orow = p * nb + b
                        irow = b * oh2 * ow2 + (i + kh) * ow2 + (j + kw)
                        sel3[t * r3 + orow, irow] = 1.0

    return sel2, sel3, p3, r2, r3, nb


def _im2col(x, k, s):
    """x: (N, H, W, C) -> patches (N*OH*OW, k*k*C), column order (kh, kw, c).
    # TODO(synk): for large inputs / batches move this in-kernel (strided
    # pl.ds row slices on an NHWC VMEM tile) to avoid the HBM round trip of
    # the ~k^2/s^2-expanded patch matrix."""
    n, h, w, c = x.shape
    oh, ow = _conv_out(h, k, s), _conv_out(w, k, s)
    cols = []
    for i in range(k):
        for j in range(k):
            cols.append(x[:, i:i + s * (oh - 1) + 1:s, j:j + s * (ow - 1) + 1:s, :])
    p = jnp.stack(cols, axis=3)                                  # (N, OH, OW, k*k, C)
    return p.reshape(n * oh * ow, k * k * c), oh, ow


# ---------------------------------------------------------------------------
# Parameters
# ---------------------------------------------------------------------------
def _uniform(key, shape, bound):
    return jax.random.uniform(key, shape, jnp.float32, -bound, bound)


def init_raw_params(key, input_shape, num_actions):
    """Raw parameters (conv HWIO, linear (in, out)), PyTorch-style init."""
    c, h, w = input_shape
    oh = _conv_out(_conv_out(_conv_out(h, 8, 4), 4, 2), 3, 1)
    ow = _conv_out(_conv_out(_conv_out(w, 8, 4), 4, 2), 3, 1)
    feat_dim = _C3 * oh * ow
    ks = jax.random.split(key, 14)
    p, i = {}, 0
    for name, k, cin, cout in (("1", 8, c, _C1), ("2", 4, _C1, _C2), ("3", 3, _C2, _C3)):
        bound = 1.0 / math.sqrt(cin * k * k)
        p["cw" + name] = _uniform(ks[i], (k, k, cin, cout), bound); i += 1
        p["cb" + name] = _uniform(ks[i], (cout,), bound); i += 1
    for name, fin, fout in (("1v", feat_dim, _HIDDEN), ("2v", _HIDDEN, 1),
                            ("1a", feat_dim, _HIDDEN), ("2a", _HIDDEN, num_actions)):
        bound = 1.0 / math.sqrt(fin)
        p["w" + name] = _uniform(ks[i], (fin, fout), bound); i += 1
        p["b" + name] = _uniform(ks[i], (fout,), bound); i += 1
    return p


def pack_params(raw, input_shape, num_actions):
    """Pack raw params into the kernel-ready layout.  All folds (the /255
    scaling, the NCHW-flatten row permutation, the stream concat, the dueling
    combine) happen here once; matmul operands are stored in bf16."""
    _, h, w = input_shape
    oh1, ow1 = _conv_out(h, 8, 4), _conv_out(w, 8, 4)
    oh2, ow2 = _conv_out(oh1, 4, 2), _conv_out(ow1, 4, 2)
    oh3, ow3 = _conv_out(oh2, 3, 1), _conv_out(ow2, 3, 1)
    assert oh3 >= 1 and ow3 >= 1, "input spatial size too small for the conv stack"
    p3 = oh3 * ow3
    feat_dim = _C3 * p3
    bf16 = jnp.bfloat16

    def perm_flat_rows(wm):
        # rows (c, p) [PyTorch NCHW flatten order] -> (p, c) [kernel row order]
        return wm.reshape(_C3, p3, _HIDDEN).transpose(1, 0, 2).reshape(feat_dim, _HIDDEN)

    # Dueling combine folded into the second head layer:
    #   Q = hh @ [ w2v broadcast | w2a - mean_cols(w2a) ] + (b2v + b2a - mean(b2a))
    w2q = jnp.concatenate(
        [jnp.broadcast_to(raw["w2v"], (_HIDDEN, num_actions)),
         raw["w2a"] - jnp.mean(raw["w2a"], axis=1, keepdims=True)], axis=0)
    b2q = (raw["b2v"] + raw["b2a"] - jnp.mean(raw["b2a"])).reshape(1, num_actions)

    return {
        # /255 input scaling folded into conv1 weights.
        "cw1s": (raw["cw1"].reshape(-1, _C1) * (1.0 / 255.0)).astype(bf16),
        "cb1": raw["cb1"].reshape(1, _C1),
        "cw2": raw["cw2"].reshape(-1, _C2).astype(bf16),    # rows = (kh, kw, cin)
        "cb2": raw["cb2"].reshape(1, _C2),
        "cw3": raw["cw3"].reshape(-1, _C3).astype(bf16),
        "cb3": raw["cb3"].reshape(1, _C3),
        "w1cat": jnp.concatenate(
            [perm_flat_rows(raw["w1v"]), perm_flat_rows(raw["w1a"])],
            axis=1).astype(bf16),                            # (p3*64, 1024)
        "b1cat": jnp.concatenate([raw["b1v"], raw["b1a"]]).reshape(1, 2 * _HIDDEN),
        "w2q": w2q.astype(bf16),                             # (1024, A)
        "b2q": b2q,                                          # (1, A), f32
    }


# ---------------------------------------------------------------------------
# Forward pass
# ---------------------------------------------------------------------------
def d3qn_forward(params, x):
    """x: (N, C, H, W) (or (N, C, H, W, 1)) with pixel values in [0, 255]."""
    if x.ndim == 5 and x.shape[-1] == 1:
        x = x[..., 0]
    n = x.shape[0]
    num_actions = params["b2q"].shape[1]

    x = jnp.transpose(x, (0, 2, 3, 1)).astype(jnp.float32)       # NCHW -> NHWC
    patches, oh1, ow1 = _im2col(x, k=8, s=4)                     # (N*OH1*OW1, 8*8*C)
    patches = patches.astype(jnp.bfloat16)

    sel2_np, sel3_np, p3, r2, r3, nb = _selector_constants(n, oh1, ow1)
    # TODO(synk): build selectors per-sample and grid over batch for replay-
    # buffer batch sizes (they are block-diagonal in batch and grow O(N^2)).
    sel2 = jnp.asarray(sel2_np, jnp.bfloat16)
    sel3 = jnp.asarray(sel3_np, jnp.bfloat16)

    assert params["w1cat"].shape[0] == p3 * _C3, "params packed for a different input shape"

    vmem_args = (patches, params["cw1s"], params["cb1"],
                 sel2, params["cw2"], params["cb2"],
                 sel3, params["cw3"], params["cb3"],
                 params["b1cat"], params["b2q"])
    hbm_args = (params["w1cat"], params["w2q"])
    all_args = vmem_args + hbm_args

    kernel = functools.partial(_d3qn_fused_kernel,
                               n=n, nb=nb, p3=p3, r2=r2, r3=r3)

    flops = 2 * (patches.shape[0] * patches.shape[1] * _C1        # conv1
                 + sel2.shape[0] * sel2.shape[1] * _C1            # gather2
                 + 16 * r2 * _C1 * _C2                            # conv2 taps
                 + sel3.shape[0] * sel3.shape[1] * _C2            # gather3
                 + 9 * r3 * _C2 * _C3                             # conv3 taps
                 + p3 * nb * _C3 * (2 * _HIDDEN)                  # head layer 1
                 + nb * (2 * _HIDDEN) * num_actions)              # head layer 2
    bytes_accessed = int(sum(int(a.size) * a.dtype.itemsize for a in all_args)
                         + n * num_actions * 4)

    return pl.pallas_call(
        kernel,
        out_shape=jax.ShapeDtypeStruct((n, num_actions), jnp.float32),
        grid=(1,),
        in_specs=[_full_spec(a.shape) for a in vmem_args]
                 + [pl.BlockSpec(memory_space=pl.ANY),            # w1cat (HBM)
                    pl.BlockSpec(memory_space=pl.ANY)],           # w2q   (HBM)
        out_specs=_full_spec((n, num_actions)),
        scratch_shapes=[pltpu.VMEM(params["w1cat"].shape, jnp.bfloat16),
                        pltpu.VMEM(params["w2q"].shape, jnp.bfloat16),
                        pltpu.SemaphoreType.DMA((2,))],
        compiler_params=pltpu.CompilerParams(
            dimension_semantics=("arbitrary",)),
        cost_estimate=pl.CostEstimate(flops=int(flops), transcendentals=0,
                                      bytes_accessed=bytes_accessed),
    )(*all_args)


# ---------------------------------------------------------------------------
# Pure-XLA reference (same math, highest precision) for a numerics check
# ---------------------------------------------------------------------------
def reference_forward(raw, x):
    hi = jax.lax.Precision.HIGHEST
    if x.ndim == 5 and x.shape[-1] == 1:
        x = x[..., 0]
    n = x.shape[0]
    y = jnp.transpose(x, (0, 2, 3, 1)).astype(jnp.float32) / 255.0
    dn = ("NHWC", "HWIO", "NHWC")
    for w, b, s in ((raw["cw1"], raw["cb1"], 4),
                    (raw["cw2"], raw["cb2"], 2),
                    (raw["cw3"], raw["cb3"], 1)):
        y = jax.lax.conv_general_dilated(y, w, (s, s), "VALID",
                                         dimension_numbers=dn, precision=hi)
        y = jnp.maximum(y + b, 0.0)
    feat = jnp.transpose(y, (0, 3, 1, 2)).reshape(n, -1)         # NCHW flatten
    hv = jnp.maximum(jnp.dot(feat, raw["w1v"], precision=hi) + raw["b1v"], 0.0)
    v = jnp.dot(hv, raw["w2v"], precision=hi) + raw["b2v"]
    ha = jnp.maximum(jnp.dot(feat, raw["w1a"], precision=hi) + raw["b1a"], 0.0)
    a = jnp.dot(ha, raw["w2a"], precision=hi) + raw["b2a"]
    return v + (a - a.mean(axis=1, keepdims=True))


# ---------------------------------------------------------------------------
if __name__ == "__main__":
    key = jax.random.PRNGKey(0)
    k_x, k_p = jax.random.split(key)

    batch, channels, spatial, num_actions = 2, 4, 36, 6   # 36 = smallest valid spatial
    input_shape = (channels, spatial, spatial)

    raw = init_raw_params(k_p, input_shape, num_actions)
    params = pack_params(raw, input_shape, num_actions)

    x = jax.random.uniform(k_x, (batch, channels, spatial, spatial),
                           jnp.float32, 0.0, 255.0)

    q_values = jax.block_until_ready(jax.jit(d3qn_forward)(params, x))
    assert q_values.shape == (batch, num_actions)

    # Numerics check against the pure-XLA reference (bf16 matmul operands in
    # the kernel vs HIGHEST-precision reference -> loose absolute tolerance).
    q_ref = reference_forward(raw, x)
    err = float(jnp.max(jnp.abs(q_values - q_ref)))
    assert err < 2e-2, f"numerics mismatch vs reference: max|diff|={err}"

    print("KERNEL_OK")
</pallas_src>

<mosaic_0001>
module attributes {stable_mosaic.version = 11 : i64} {
  func.func @_d3qn_fused_kernel(%arg0: i32, %arg1: memref<128x256xbf16, #tpu.memory_space<vmem>>, %arg2: memref<256x32xbf16, #tpu.memory_space<vmem>>, %arg3: memref<1x32xf32, #tpu.memory_space<vmem>>, %arg4: memref<512x128xbf16, #tpu.memory_space<vmem>>, %arg5: memref<512x64xbf16, #tpu.memory_space<vmem>>, %arg6: memref<1x64xf32, #tpu.memory_space<vmem>>, %arg7: memref<144x32xbf16, #tpu.memory_space<vmem>>, %arg8: memref<576x64xbf16, #tpu.memory_space<vmem>>, %arg9: memref<1x64xf32, #tpu.memory_space<vmem>>, %arg10: memref<1x1024xf32, #tpu.memory_space<vmem>>, %arg11: memref<1x6xf32, #tpu.memory_space<vmem>>, %arg12: memref<64x1024xbf16, #tpu.memory_space<any>>, %arg13: memref<1024x6xbf16, #tpu.memory_space<any>>, %arg14: memref<2x6xf32, #tpu.memory_space<vmem>>, %arg15: memref<64x1024xbf16, #tpu.memory_space<vmem>>, %arg16: memref<1024x6xbf16, #tpu.memory_space<vmem>>, %arg17: memref<2x!tpu.dma_semaphore, #tpu.memory_space<semaphore_mem>>) attributes {dimension_semantics = [#tpu.dimension_semantics<arbitrary>], iteration_bounds = array<i64: 1>, scalar_prefetch = 0 : i64, scratch_operands = 3 : i64, tpu.core_type = #tpu.core_type<tc>, window_params = [{pipeline_mode = #tpu.pipeline_mode<synchronous>, transform_indices = @transform_0, window_bounds = array<i64: 128, 256>}, {pipeline_mode = #tpu.pipeline_mode<synchronous>, transform_indices = @transform_1, window_bounds = array<i64: 256, 32>}, {pipeline_mode = #tpu.pipeline_mode<synchronous>, transform_indices = @transform_2, window_bounds = array<i64: 1, 32>}, {pipeline_mode = #tpu.pipeline_mode<synchronous>, transform_indices = @transform_3, window_bounds = array<i64: 512, 128>}, {pipeline_mode = #tpu.pipeline_mode<synchronous>, transform_indices = @transform_4, window_bounds = array<i64: 512, 64>}, {pipeline_mode = #tpu.pipeline_mode<synchronous>, transform_indices = @transform_5, window_bounds = array<i64: 1, 64>}, {pipeline_mode = #tpu.pipeline_mode<synchronous>, transform_indices = @transform_6, window_bounds = array<i64: 144, 32>}, {pipeline_mode = #tpu.pipeline_mode<synchronous>, transform_indices = @transform_7, window_bounds = array<i64: 576, 64>}, {pipeline_mode = #tpu.pipeline_mode<synchronous>, transform_indices = @transform_8, window_bounds = array<i64: 1, 64>}, {pipeline_mode = #tpu.pipeline_mode<synchronous>, transform_indices = @transform_9, window_bounds = array<i64: 1, 1024>}, {pipeline_mode = #tpu.pipeline_mode<synchronous>, transform_indices = @transform_10, window_bounds = array<i64: 1, 6>}, {}, {}, {pipeline_mode = #tpu.pipeline_mode<synchronous>, transform_indices = @transform_13, window_bounds = array<i64: 2, 6>}]} {
    %c0_i32 = arith.constant 0 : i32
    %0 = tpu.memref_slice %arg17[%c0_i32] : memref<2x!tpu.dma_semaphore, #tpu.memory_space<semaphore_mem>> -> memref<1x!tpu.dma_semaphore, #tpu.memory_space<semaphore_mem>>
    %1 = tpu.memref_squeeze %0 : memref<1x!tpu.dma_semaphore, #tpu.memory_space<semaphore_mem>> -> memref<!tpu.dma_semaphore, #tpu.memory_space<semaphore_mem>>
    tpu.enqueue_dma source(%arg12 : memref<64x1024xbf16, #tpu.memory_space<any>>) target(%arg15 : memref<64x1024xbf16, #tpu.memory_space<vmem>>) target_semaphore(%1 : memref<!tpu.dma_semaphore, #tpu.memory_space<semaphore_mem>>)
    %c1_i32 = arith.constant 1 : i32
    %2 = tpu.memref_slice %arg17[%c1_i32] : memref<2x!tpu.dma_semaphore, #tpu.memory_space<semaphore_mem>> -> memref<1x!tpu.dma_semaphore, #tpu.memory_space<semaphore_mem>>
    %3 = tpu.memref_squeeze %2 : memref<1x!tpu.dma_semaphore, #tpu.memory_space<semaphore_mem>> -> memref<!tpu.dma_semaphore, #tpu.memory_space<semaphore_mem>>
    tpu.enqueue_dma source(%arg13 : memref<1024x6xbf16, #tpu.memory_space<any>>) target(%arg16 : memref<1024x6xbf16, #tpu.memory_space<vmem>>) target_semaphore(%3 : memref<!tpu.dma_semaphore, #tpu.memory_space<semaphore_mem>>)
    %c0 = arith.constant 0 : index
    %c0_0 = arith.constant 0 : index
    %4 = vector.load %arg1[%c0, %c0_0] : memref<128x256xbf16, #tpu.memory_space<vmem>>, vector<128x256xbf16>
    %c0_1 = arith.constant 0 : index
    %c0_2 = arith.constant 0 : index
    %5 = vector.load %arg2[%c0_1, %c0_2] : memref<256x32xbf16, #tpu.memory_space<vmem>>, vector<256x32xbf16>
    %cst = arith.constant dense<0.000000e+00> : vector<128x32xf32>
    %6 = tpu.matmul %4, %5, %cst {dimension_numbers = #tpu.dot_dimension_numbers<[1], [0], [0], [1], [0, 0, 1, 1], [], []>} : vector<128x256xbf16>, vector<256x32xbf16>, vector<128x32xf32> -> vector<128x32xf32>
    %c0_3 = arith.constant 0 : index
    %c0_4 = arith.constant 0 : index
    %7 = vector.load %arg3[%c0_3, %c0_4] : memref<1x32xf32, #tpu.memory_space<vmem>>, vector<1x32xf32>
    %8 = vector.broadcast %7 : vector<1x32xf32> to vector<128x32xf32>
    %9 = arith.addf %6, %8 : vector<128x32xf32>
    %cst_5 = arith.constant 0.000000e+00 : f32
    %10 = vector.broadcast %cst_5 : f32 to vector<128x32xf32>
    %11 = arith.maximumf %9, %10 : vector<128x32xf32>
    %12 = arith.truncf %11 : vector<128x32xf32> to vector<128x32xbf16>
    %c0_6 = arith.constant 0 : index
    %c0_7 = arith.constant 0 : index
    %13 = vector.load %arg4[%c0_6, %c0_7] : memref<512x128xbf16, #tpu.memory_space<vmem>>, vector<512x128xbf16>
    %cst_8 = arith.constant dense<0.000000e+00> : vector<512x32xf32>
    %14 = tpu.matmul %13, %12, %cst_8 {dimension_numbers = #tpu.dot_dimension_numbers<[1], [0], [0], [1], [0, 0, 1, 1], [], []>} : vector<512x128xbf16>, vector<128x32xbf16>, vector<512x32xf32> -> vector<512x32xf32>
    %15 = arith.truncf %14 : vector<512x32xf32> to vector<512x32xbf16>
    %16 = vector.extract_strided_slice %15 {offsets = [0, 0], sizes = [32, 32], strides = [1, 1]} : vector<512x32xbf16> to vector<32x32xbf16>
    %c0_9 = arith.constant 0 : index
    %c0_10 = arith.constant 0 : index
    %17 = vector.load %arg5[%c0_9, %c0_10] : memref<512x64xbf16, #tpu.memory_space<vmem>>, vector<32x64xbf16>
    %cst_11 = arith.constant dense<0.000000e+00> : vector<32x64xf32>
    %18 = tpu.matmul %16, %17, %cst_11 {dimension_numbers = #tpu.dot_dimension_numbers<[1], [0], [0], [1], [0, 0, 1, 1], [], []>} : vector<32x32xbf16>, vector<32x64xbf16>, vector<32x64xf32> -> vector<32x64xf32>
    %19 = vector.extract_strided_slice %15 {offsets = [32, 0], sizes = [32, 32], strides = [1, 1]} : vector<512x32xbf16> to vector<32x32xbf16>
    %c32 = arith.constant 32 : index
    %c0_12 = arith.constant 0 : index
    %20 = vector.load %arg5[%c32, %c0_12] : memref<512x64xbf16, #tpu.memory_space<vmem>>, vector<32x64xbf16>
    %cst_13 = arith.constant dense<0.000000e+00> : vector<32x64xf32>
    %21 = tpu.matmul %19, %20, %cst_13 {dimension_numbers = #tpu.dot_dimension_numbers<[1], [0], [0], [1], [0, 0, 1, 1], [], []>} : vector<32x32xbf16>, vector<32x64xbf16>, vector<32x64xf32> -> vector<32x64xf32>
    %22 = arith.addf %18, %21 : vector<32x64xf32>
    %23 = vector.extract_strided_slice %15 {offsets = [64, 0], sizes = [32, 32], strides = [1, 1]} : vector<512x32xbf16> to vector<32x32xbf16>
    %c64 = arith.constant 64 : index
    %c0_14 = arith.constant 0 : index
    %24 = vector.load %arg5[%c64, %c0_14] : memref<512x64xbf16, #tpu.memory_space<vmem>>, vector<32x64xbf16>
    %cst_15 = arith.constant dense<0.000000e+00> : vector<32x64xf32>
    %25 = tpu.matmul %23, %24, %cst_15 {dimension_numbers = #tpu.dot_dimension_numbers<[1], [0], [0], [1], [0, 0, 1, 1], [], []>} : vector<32x32xbf16>, vector<32x64xbf16>, vector<32x64xf32> -> vector<32x64xf32>
    %26 = arith.addf %22, %25 : vector<32x64xf32>
    %27 = vector.extract_strided_slice %15 {offsets = [96, 0], sizes = [32, 32], strides = [1, 1]} : vector<512x32xbf16> to vector<32x32xbf16>
    %c96 = arith.constant 96 : index
    %c0_16 = arith.constant 0 : index
    %28 = vector.load %arg5[%c96, %c0_16] : memref<512x64xbf16, #tpu.memory_space<vmem>>, vector<32x64xbf16>
    %cst_17 = arith.constant dense<0.000000e+00> : vector<32x64xf32>
    %29 = tpu.matmul %27, %28, %cst_17 {dimension_numbers = #tpu.dot_dimension_numbers<[1], [0], [0], [1], [0, 0, 1, 1], [], []>} : vector<32x32xbf16>, vector<32x64xbf16>, vector<32x64xf32> -> vector<32x64xf32>
    %30 = arith.addf %26, %29 : vector<32x64xf32>
    %31 = vector.extract_strided_slice %15 {offsets = [128, 0], sizes = [32, 32], strides = [1, 1]} : vector<512x32xbf16> to vector<32x32xbf16>
    %c128 = arith.constant 128 : index
    %c0_18 = arith.constant 0 : index
    %32 = vector.load %arg5[%c128, %c0_18] : memref<512x64xbf16, #tpu.memory_space<vmem>>, vector<32x64xbf16>
    %cst_19 = arith.constant dense<0.000000e+00> : vector<32x64xf32>
    %33 = tpu.matmul %31, %32, %cst_19 {dimension_numbers = #tpu.dot_dimension_numbers<[1], [0], [0], [1], [0, 0, 1, 1], [], []>} : vector<32x32xbf16>, vector<32x64xbf16>, vector<32x64xf32> -> vector<32x64xf32>
    %34 = arith.addf %30, %33 : vector<32x64xf32>
    %35 = vector.extract_strided_slice %15 {offsets = [160, 0], sizes = [32, 32], strides = [1, 1]} : vector<512x32xbf16> to vector<32x32xbf16>
    %c160 = arith.constant 160 : index
    %c0_20 = arith.constant 0 : index
    %36 = vector.load %arg5[%c160, %c0_20] : memref<512x64xbf16, #tpu.memory_space<vmem>>, vector<32x64xbf16>
    %cst_21 = arith.constant dense<0.000000e+00> : vector<32x64xf32>
    %37 = tpu.matmul %35, %36, %cst_21 {dimension_numbers = #tpu.dot_dimension_numbers<[1], [0], [0], [1], [0, 0, 1, 1], [], []>} : vector<32x32xbf16>, vector<32x64xbf16>, vector<32x64xf32> -> vector<32x64xf32>
    %38 = arith.addf %34, %37 : vector<32x64xf32>
    %39 = vector.extract_strided_slice %15 {offsets = [192, 0], sizes = [32, 32], strides = [1, 1]} : vector<512x32xbf16> to vector<32x32xbf16>
    %c192 = arith.constant 192 : index
    %c0_22 = arith.constant 0 : index
    %40 = vector.load %arg5[%c192, %c0_22] : memref<512x64xbf16, #tpu.memory_space<vmem>>, vector<32x64xbf16>
    %cst_23 = arith.constant dense<0.000000e+00> : vector<32x64xf32>
    %41 = tpu.matmul %39, %40, %cst_23 {dimension_numbers = #tpu.dot_dimension_numbers<[1], [0], [0], [1], [0, 0, 1, 1], [], []>} : vector<32x32xbf16>, vector<32x64xbf16>, vector<32x64xf32> -> vector<32x64xf32>
    %42 = arith.addf %38, %41 : vector<32x64xf32>
    %43 = vector.extract_strided_slice %15 {offsets = [224, 0], sizes = [32, 32], strides = [1, 1]} : vector<512x32xbf16> to vector<32x32xbf16>
    %c224 = arith.constant 224 : index
    %c0_24 = arith.constant 0 : index
    %44 = vector.load %arg5[%c224, %c0_24] : memref<512x64xbf16, #tpu.memory_space<vmem>>, vector<32x64xbf16>
    %cst_25 = arith.constant dense<0.000000e+00> : vector<32x64xf32>
    %45 = tpu.matmul %43, %44, %cst_25 {dimension_numbers = #tpu.dot_dimension_numbers<[1], [0], [0], [1], [0, 0, 1, 1], [], []>} : vector<32x32xbf16>, vector<32x64xbf16>, vector<32x64xf32> -> vector<32x64xf32>
    %46 = arith.addf %42, %45 : vector<32x64xf32>
    %47 = vector.extract_strided_slice %15 {offsets = [256, 0], sizes = [32, 32], strides = [1, 1]} : vector<512x32xbf16> to vector<32x32xbf16>
    %c256 = arith.constant 256 : index
    %c0_26 = arith.constant 0 : index
    %48 = vector.load %arg5[%c256, %c0_26] : memref<512x64xbf16, #tpu.memory_space<vmem>>, vector<32x64xbf16>
    %cst_27 = arith.constant dense<0.000000e+00> : vector<32x64xf32>
    %49 = tpu.matmul %47, %48, %cst_27 {dimension_numbers = #tpu.dot_dimension_numbers<[1], [0], [0], [1], [0, 0, 1, 1], [], []>} : vector<32x32xbf16>, vector<32x64xbf16>, vector<32x64xf32> -> vector<32x64xf32>
    %50 = arith.addf %46, %49 : vector<32x64xf32>
    %51 = vector.extract_strided_slice %15 {offsets = [288, 0], sizes = [32, 32], strides = [1, 1]} : vector<512x32xbf16> to vector<32x32xbf16>
    %c288 = arith.constant 288 : index
    %c0_28 = arith.constant 0 : index
    %52 = vector.load %arg5[%c288, %c0_28] : memref<512x64xbf16, #tpu.memory_space<vmem>>, vector<32x64xbf16>
    %cst_29 = arith.constant dense<0.000000e+00> : vector<32x64xf32>
    %53 = tpu.matmul %51, %52, %cst_29 {dimension_numbers = #tpu.dot_dimension_numbers<[1], [0], [0], [1], [0, 0, 1, 1], [], []>} : vector<32x32xbf16>, vector<32x64xbf16>, vector<32x64xf32> -> vector<32x64xf32>
    %54 = arith.addf %50, %53 : vector<32x64xf32>
    %55 = vector.extract_strided_slice %15 {offsets = [320, 0], sizes = [32, 32], strides = [1, 1]} : vector<512x32xbf16> to vector<32x32xbf16>
    %c320 = arith.constant 320 : index
    %c0_30 = arith.constant 0 : index
    %56 = vector.load %arg5[%c320, %c0_30] : memref<512x64xbf16, #tpu.memory_space<vmem>>, vector<32x64xbf16>
    %cst_31 = arith.constant dense<0.000000e+00> : vector<32x64xf32>
    %57 = tpu.matmul %55, %56, %cst_31 {dimension_numbers = #tpu.dot_dimension_numbers<[1], [0], [0], [1], [0, 0, 1, 1], [], []>} : vector<32x32xbf16>, vector<32x64xbf16>, vector<32x64xf32> -> vector<32x64xf32>
    %58 = arith.addf %54, %57 : vector<32x64xf32>
    %59 = vector.extract_strided_slice %15 {offsets = [352, 0], sizes = [32, 32], strides = [1, 1]} : vector<512x32xbf16> to vector<32x32xbf16>
    %c352 = arith.constant 352 : index
    %c0_32 = arith.constant 0 : index
    %60 = vector.load %arg5[%c352, %c0_32] : memref<512x64xbf16, #tpu.memory_space<vmem>>, vector<32x64xbf16>
    %cst_33 = arith.constant dense<0.000000e+00> : vector<32x64xf32>
    %61 = tpu.matmul %59, %60, %cst_33 {dimension_numbers = #tpu.dot_dimension_numbers<[1], [0], [0], [1], [0, 0, 1, 1], [], []>} : vector<32x32xbf16>, vector<32x64xbf16>, vector<32x64xf32> -> vector<32x64xf32>
    %62 = arith.addf %58, %61 : vector<32x64xf32>
    %63 = vector.extract_strided_slice %15 {offsets = [384, 0], sizes = [32, 32], strides = [1, 1]} : vector<512x32xbf16> to vector<32x32xbf16>
    %c384 = arith.constant 384 : index
    %c0_34 = arith.constant 0 : index
    %64 = vector.load %arg5[%c384, %c0_34] : memref<512x64xbf16, #tpu.memory_space<vmem>>, vector<32x64xbf16>
    %cst_35 = arith.constant dense<0.000000e+00> : vector<32x64xf32>
    %65 = tpu.matmul %63, %64, %cst_35 {dimension_numbers = #tpu.dot_dimension_numbers<[1], [0], [0], [1], [0, 0, 1, 1], [], []>} : vector<32x32xbf16>, vector<32x64xbf16>, vector<32x64xf32> -> vector<32x64xf32>
    %66 = arith.addf %62, %65 : vector<32x64xf32>
    %67 = vector.extract_strided_slice %15 {offsets = [416, 0], sizes = [32, 32], strides = [1, 1]} : vector<512x32xbf16> to vector<32x32xbf16>
    %c416 = arith.constant 416 : index
    %c0_36 = arith.constant 0 : index
    %68 = vector.load %arg5[%c416, %c0_36] : memref<512x64xbf16, #tpu.memory_space<vmem>>, vector<32x64xbf16>
    %cst_37 = arith.constant dense<0.000000e+00> : vector<32x64xf32>
    %69 = tpu.matmul %67, %68, %cst_37 {dimension_numbers = #tpu.dot_dimension_numbers<[1], [0], [0], [1], [0, 0, 1, 1], [], []>} : vector<32x32xbf16>, vector<32x64xbf16>, vector<32x64xf32> -> vector<32x64xf32>
    %70 = arith.addf %66, %69 : vector<32x64xf32>
    %71 = vector.extract_strided_slice %15 {offsets = [448, 0], sizes = [32, 32], strides = [1, 1]} : vector<512x32xbf16> to vector<32x32xbf16>
    %c448 = arith.constant 448 : index
    %c0_38 = arith.constant 0 : index
    %72 = vector.load %arg5[%c448, %c0_38] : memref<512x64xbf16, #tpu.memory_space<vmem>>, vector<32x64xbf16>
    %cst_39 = arith.constant dense<0.000000e+00> : vector<32x64xf32>
    %73 = tpu.matmul %71, %72, %cst_39 {dimension_numbers = #tpu.dot_dimension_numbers<[1], [0], [0], [1], [0, 0, 1, 1], [], []>} : vector<32x32xbf16>, vector<32x64xbf16>, vector<32x64xf32> -> vector<32x64xf32>
    %74 = arith.addf %70, %73 : vector<32x64xf32>
    %75 = vector.extract_strided_slice %15 {offsets = [480, 0], sizes = [32, 32], strides = [1, 1]} : vector<512x32xbf16> to vector<32x32xbf16>
    %c480 = arith.constant 480 : index
    %c0_40 = arith.constant 0 : index
    %76 = vector.load %arg5[%c480, %c0_40] : memref<512x64xbf16, #tpu.memory_space<vmem>>, vector<32x64xbf16>
    %cst_41 = arith.constant dense<0.000000e+00> : vector<32x64xf32>
    %77 = tpu.matmul %75, %76, %cst_41 {dimension_numbers = #tpu.dot_dimension_numbers<[1], [0], [0], [1], [0, 0, 1, 1], [], []>} : vector<32x32xbf16>, vector<32x64xbf16>, vector<32x64xf32> -> vector<32x64xf32>
    %78 = arith.addf %74, %77 : vector<32x64xf32>
    %c0_42 = arith.constant 0 : index
    %c0_43 = arith.constant 0 : index
    %79 = vector.load %arg6[%c0_42, %c0_43] : memref<1x64xf32, #tpu.memory_space<vmem>>, vector<1x64xf32>
    %80 = vector.broadcast %79 : vector<1x64xf32> to vector<32x64xf32>
    %81 = arith.addf %78, %80 : vector<32x64xf32>
    %cst_44 = arith.constant 0.000000e+00 : f32
    %82 = vector.broadcast %cst_44 : f32 to vector<32x64xf32>
    %83 = arith.maximumf %81, %82 : vector<32x64xf32>
    %84 = arith.truncf %83 : vector<32x64xf32> to vector<32x64xbf16>
    %c0_45 = arith.constant 0 : index
    %c0_46 = arith.constant 0 : index
    %85 = vector.load %arg7[%c0_45, %c0_46] : memref<144x32xbf16, #tpu.memory_space<vmem>>, vector<144x32xbf16>
    %cst_47 = arith.constant dense<0.000000e+00> : vector<144x64xf32>
    %86 = tpu.matmul %85, %84, %cst_47 {dimension_numbers = #tpu.dot_dimension_numbers<[1], [0], [0], [1], [0, 0, 1, 1], [], []>} : vector<144x32xbf16>, vector<32x64xbf16>, vector<144x64xf32> -> vector<144x64xf32>
    %87 = arith.truncf %86 : vector<144x64xf32> to vector<144x64xbf16>
    %88 = vector.extract_strided_slice %87 {offsets = [0, 0], sizes = [16, 64], strides = [1, 1]} : vector<144x64xbf16> to vector<16x64xbf16>
    %c0_48 = arith.constant 0 : index
    %c0_49 = arith.constant 0 : index
    %89 = vector.load %arg8[%c0_48, %c0_49] : memref<576x64xbf16, #tpu.memory_space<vmem>>, vector<64x64xbf16>
    %cst_50 = arith.constant dense<0.000000e+00> : vector<16x64xf32>
    %90 = tpu.matmul %88, %89, %cst_50 {dimension_numbers = #tpu.dot_dimension_numbers<[1], [0], [0], [1], [0, 0, 1, 1], [], []>} : vector<16x64xbf16>, vector<64x64xbf16>, vector<16x64xf32> -> vector<16x64xf32>
    %91 = vector.extract_strided_slice %87 {offsets = [16, 0], sizes = [16, 64], strides = [1, 1]} : vector<144x64xbf16> to vector<16x64xbf16>
    %c64_51 = arith.constant 64 : index
    %c0_52 = arith.constant 0 : index
    %92 = vector.load %arg8[%c64_51, %c0_52] : memref<576x64xbf16, #tpu.memory_space<vmem>>, vector<64x64xbf16>
    %cst_53 = arith.constant dense<0.000000e+00> : vector<16x64xf32>
    %93 = tpu.matmul %91, %92, %cst_53 {dimension_numbers = #tpu.dot_dimension_numbers<[1], [0], [0], [1], [0, 0, 1, 1], [], []>} : vector<16x64xbf16>, vector<64x64xbf16>, vector<16x64xf32> -> vector<16x64xf32>
    %94 = arith.addf %90, %93 : vector<16x64xf32>
    %95 = vector.extract_strided_slice %87 {offsets = [32, 0], sizes = [16, 64], strides = [1, 1]} : vector<144x64xbf16> to vector<16x64xbf16>
    %c128_54 = arith.constant 128 : index
    %c0_55 = arith.constant 0 : index
    %96 = vector.load %arg8[%c128_54, %c0_55] : memref<576x64xbf16, #tpu.memory_space<vmem>>, vector<64x64xbf16>
    %cst_56 = arith.constant dense<0.000000e+00> : vector<16x64xf32>
    %97 = tpu.matmul %95, %96, %cst_56 {dimension_numbers = #tpu.dot_dimension_numbers<[1], [0], [0], [1], [0, 0, 1, 1], [], []>} : vector<16x64xbf16>, vector<64x64xbf16>, vector<16x64xf32> -> vector<16x64xf32>
    %98 = arith.addf %94, %97 : vector<16x64xf32>
    %99 = vector.extract_strided_slice %87 {offsets = [48, 0], sizes = [16, 64], strides = [1, 1]} : vector<144x64xbf16> to vector<16x64xbf16>
    %c192_57 = arith.constant 192 : index
    %c0_58 = arith.constant 0 : index
    %100 = vector.load %arg8[%c192_57, %c0_58] : memref<576x64xbf16, #tpu.memory_space<vmem>>, vector<64x64xbf16>
    %cst_59 = arith.constant dense<0.000000e+00> : vector<16x64xf32>
    %101 = tpu.matmul %99, %100, %cst_59 {dimension_numbers = #tpu.dot_dimension_numbers<[1], [0], [0], [1], [0, 0, 1, 1], [], []>} : vector<16x64xbf16>, vector<64x64xbf16>, vector<16x64xf32> -> vector<16x64xf32>
    %102 = arith.addf %98, %101 : vector<16x64xf32>
    %103 = vector.extract_strided_slice %87 {offsets = [64, 0], sizes = [16, 64], strides = [1, 1]} : vector<144x64xbf16> to vector<16x64xbf16>
    %c256_60 = arith.constant 256 : index
    %c0_61 = arith.constant 0 : index
    %104 = vector.load %arg8[%c256_60, %c0_61] : memref<576x64xbf16, #tpu.memory_space<vmem>>, vector<64x64xbf16>
    %cst_62 = arith.constant dense<0.000000e+00> : vector<16x64xf32>
    %105 = tpu.matmul %103, %104, %cst_62 {dimension_numbers = #tpu.dot_dimension_numbers<[1], [0], [0], [1], [0, 0, 1, 1], [], []>} : vector<16x64xbf16>, vector<64x64xbf16>, vector<16x64xf32> -> vector<16x64xf32>
    %106 = arith.addf %102, %105 : vector<16x64xf32>
    %107 = vector.extract_strided_slice %87 {offsets = [80, 0], sizes = [16, 64], strides = [1, 1]} : vector<144x64xbf16> to vector<16x64xbf16>
    %c320_63 = arith.constant 320 : index
    %c0_64 = arith.constant 0 : index
    %108 = vector.load %arg8[%c320_63, %c0_64] : memref<576x64xbf16, #tpu.memory_space<vmem>>, vector<64x64xbf16>
    %cst_65 = arith.constant dense<0.000000e+00> : vector<16x64xf32>
    %109 = tpu.matmul %107, %108, %cst_65 {dimension_numbers = #tpu.dot_dimension_numbers<[1], [0], [0], [1], [0, 0, 1, 1], [], []>} : vector<16x64xbf16>, vector<64x64xbf16>, vector<16x64xf32> -> vector<16x64xf32>
    %110 = arith.addf %106, %109 : vector<16x64xf32>
    %111 = vector.extract_strided_slice %87 {offsets = [96, 0], sizes = [16, 64], strides = [1, 1]} : vector<144x64xbf16> to vector<16x64xbf16>
    %c384_66 = arith.constant 384 : index
    %c0_67 = arith.constant 0 : index
    %112 = vector.load %arg8[%c384_66, %c0_67] : memref<576x64xbf16, #tpu.memory_space<vmem>>, vector<64x64xbf16>
    %cst_68 = arith.constant dense<0.000000e+00> : vector<16x64xf32>
    %113 = tpu.matmul %111, %112, %cst_68 {dimension_numbers = #tpu.dot_dimension_numbers<[1], [0], [0], [1], [0, 0, 1, 1], [], []>} : vector<16x64xbf16>, vector<64x64xbf16>, vector<16x64xf32> -> vector<16x64xf32>
    %114 = arith.addf %110, %113 : vector<16x64xf32>
    %115 = vector.extract_strided_slice %87 {offsets = [112, 0], sizes = [16, 64], strides = [1, 1]} : vector<144x64xbf16> to vector<16x64xbf16>
    %c448_69 = arith.constant 448 : index
    %c0_70 = arith.constant 0 : index
    %116 = vector.load %arg8[%c448_69, %c0_70] : memref<576x64xbf16, #tpu.memory_space<vmem>>, vector<64x64xbf16>
    %cst_71 = arith.constant dense<0.000000e+00> : vector<16x64xf32>
    %117 = tpu.matmul %115, %116, %cst_71 {dimension_numbers = #tpu.dot_dimension_numbers<[1], [0], [0], [1], [0, 0, 1, 1], [], []>} : vector<16x64xbf16>, vector<64x64xbf16>, vector<16x64xf32> -> vector<16x64xf32>
    %118 = arith.addf %114, %117 : vector<16x64xf32>
    %119 = vector.extract_strided_slice %87 {offsets = [128, 0], sizes = [16, 64], strides = [1, 1]} : vector<144x64xbf16> to vector<16x64xbf16>
    %c512 = arith.constant 512 : index
    %c0_72 = arith.constant 0 : index
    %120 = vector.load %arg8[%c512, %c0_72] : memref<576x64xbf16, #tpu.memory_space<vmem>>, vector<64x64xbf16>
    %cst_73 = arith.constant dense<0.000000e+00> : vector<16x64xf32>
    %121 = tpu.matmul %119, %120, %cst_73 {dimension_numbers = #tpu.dot_dimension_numbers<[1], [0], [0], [1], [0, 0, 1, 1], [], []>} : vector<16x64xbf16>, vector<64x64xbf16>, vector<16x64xf32> -> vector<16x64xf32>
    %122 = arith.addf %118, %121 : vector<16x64xf32>
    %c0_74 = arith.constant 0 : index
    %c0_75 = arith.constant 0 : index
    %123 = vector.load %arg9[%c0_74, %c0_75] : memref<1x64xf32, #tpu.memory_space<vmem>>, vector<1x64xf32>
    %124 = vector.broadcast %123 : vector<1x64xf32> to vector<16x64xf32>
    %125 = arith.addf %122, %124 : vector<16x64xf32>
    %cst_76 = arith.constant 0.000000e+00 : f32
    %126 = vector.broadcast %cst_76 : f32 to vector<16x64xf32>
    %127 = arith.maximumf %125, %126 : vector<16x64xf32>
    %128 = arith.truncf %127 : vector<16x64xf32> to vector<16x64xbf16>
    %c0_i32_77 = arith.constant 0 : i32
    %129 = tpu.memref_slice %arg17[%c0_i32_77] : memref<2x!tpu.dma_semaphore, #tpu.memory_space<semaphore_mem>> -> memref<1x!tpu.dma_semaphore, #tpu.memory_space<semaphore_mem>>
    %130 = tpu.memref_squeeze %129 : memref<1x!tpu.dma_semaphore, #tpu.memory_space<semaphore_mem>> -> memref<!tpu.dma_semaphore, #tpu.memory_space<semaphore_mem>>
    tpu.wait_dma2 semaphore(%130 : memref<!tpu.dma_semaphore, #tpu.memory_space<semaphore_mem>>) src(%arg12 : memref<64x1024xbf16, #tpu.memory_space<any>>) dst(%arg15 : memref<64x1024xbf16, #tpu.memory_space<vmem>>)
    %c0_78 = arith.constant 0 : index
    %c0_79 = arith.constant 0 : index
    %131 = vector.load %arg15[%c0_78, %c0_79] : memref<64x1024xbf16, #tpu.memory_space<vmem>>, vector<64x1024xbf16>
    %cst_80 = arith.constant dense<0.000000e+00> : vector<16x1024xf32>
    %132 = tpu.matmul %128, %131, %cst_80 {dimension_numbers = #tpu.dot_dimension_numbers<[1], [0], [0], [1], [0, 0, 1, 1], [], []>} : vector<16x64xbf16>, vector<64x1024xbf16>, vector<16x1024xf32> -> vector<16x1024xf32>
    %c0_81 = arith.constant 0 : index
    %c0_82 = arith.constant 0 : index
    %133 = vector.load %arg10[%c0_81, %c0_82] : memref<1x1024xf32, #tpu.memory_space<vmem>>, vector<1x1024xf32>
    %134 = vector.broadcast %133 : vector<1x1024xf32> to vector<16x1024xf32>
    %135 = arith.addf %132, %134 : vector<16x1024xf32>
    %cst_83 = arith.constant 0.000000e+00 : f32
    %136 = vector.broadcast %cst_83 : f32 to vector<16x1024xf32>
    %137 = arith.maximumf %135, %136 : vector<16x1024xf32>
    %138 = arith.truncf %137 : vector<16x1024xf32> to vector<16x1024xbf16>
    %c1_i32_84 = arith.constant 1 : i32
    %139 = tpu.memref_slice %arg17[%c1_i32_84] : memref<2x!tpu.dma_semaphore, #tpu.memory_space<semaphore_mem>> -> memref<1x!tpu.dma_semaphore, #tpu.memory_space<semaphore_mem>>
    %140 = tpu.memref_squeeze %139 : memref<1x!tpu.dma_semaphore, #tpu.memory_space<semaphore_mem>> -> memref<!tpu.dma_semaphore, #tpu.memory_space<semaphore_mem>>
    tpu.wait_dma2 semaphore(%140 : memref<!tpu.dma_semaphore, #tpu.memory_space<semaphore_mem>>) src(%arg13 : memref<1024x6xbf16, #tpu.memory_space<any>>) dst(%arg16 : memref<1024x6xbf16, #tpu.memory_space<vmem>>)
    %c0_85 = arith.constant 0 : index
    %c0_86 = arith.constant 0 : index
    %141 = vector.load %arg16[%c0_85, %c0_86] : memref<1024x6xbf16, #tpu.memory_space<vmem>>, vector<1024x6xbf16>
    %cst_87 = arith.constant dense<0.000000e+00> : vector<16x6xf32>
    %142 = tpu.matmul %138, %141, %cst_87 {dimension_numbers = #tpu.dot_dimension_numbers<[1], [0], [0], [1], [0, 0, 1, 1], [], []>} : vector<16x1024xbf16>, vector<1024x6xbf16>, vector<16x6xf32> -> vector<16x6xf32>
    %c0_88 = arith.constant 0 : index
    %c0_89 = arith.constant 0 : index
    %143 = vector.load %arg11[%c0_88, %c0_89] : memref<1x6xf32, #tpu.memory_space<vmem>>, vector<1x6xf32>
    %144 = vector.broadcast %143 : vector<1x6xf32> to vector<16x6xf32>
    %145 = arith.addf %142, %144 : vector<16x6xf32>
    %146 = vector.extract_strided_slice %145 {offsets = [0, 0], sizes = [2, 6], strides = [1, 1]} : vector<16x6xf32> to vector<2x6xf32>
    %c0_90 = arith.constant 0 : index
    %c0_91 = arith.constant 0 : index
    %147 = vector.load %arg14[%c0_90, %c0_91] : memref<2x6xf32, #tpu.memory_space<vmem>>, vector<2x6xf32>
    tpu.vector_store %arg14[%c0_90, %c0_91], %146 {strides = array<i32>} : memref<2x6xf32, #tpu.memory_space<vmem>>, vector<2x6xf32>,
    return
  }
  func.func @transform_0(%arg0: i32) -> (i32, i32) {
    %c0_i32 = arith.constant 0 : i32
    %c0_i32_0 = arith.constant 0 : i32
    %c0_i32_1 = arith.constant 0 : i32
    return %c0_i32, %c0_i32_0 : i32, i32
  }
  func.func @transform_1(%arg0: i32) -> (i32, i32) {
    %c0_i32 = arith.constant 0 : i32
    %c0_i32_0 = arith.constant 0 : i32
    %c0_i32_1 = arith.constant 0 : i32
    return %c0_i32, %c0_i32_0 : i32, i32
  }
  func.func @transform_2(%arg0: i32) -> (i32, i32) {
    %c0_i32 = arith.constant 0 : i32
    %c0_i32_0 = arith.constant 0 : i32
    %c0_i32_1 = arith.constant 0 : i32
    return %c0_i32, %c0_i32_0 : i32, i32
  }
  func.func @transform_3(%arg0: i32) -> (i32, i32) {
    %c0_i32 = arith.constant 0 : i32
    %c0_i32_0 = arith.constant 0 : i32
    %c0_i32_1 = arith.constant 0 : i32
    return %c0_i32, %c0_i32_0 : i32, i32
  }
  func.func @transform_4(%arg0: i32) -> (i32, i32) {
    %c0_i32 = arith.constant 0 : i32
    %c0_i32_0 = arith.constant 0 : i32
    %c0_i32_1 = arith.constant 0 : i32
    return %c0_i32, %c0_i32_0 : i32, i32
  }
  func.func @transform_5(%arg0: i32) -> (i32, i32) {
    %c0_i32 = arith.constant 0 : i32
    %c0_i32_0 = arith.constant 0 : i32
    %c0_i32_1 = arith.constant 0 : i32
    return %c0_i32, %c0_i32_0 : i32, i32
  }
  func.func @transform_6(%arg0: i32) -> (i32, i32) {
    %c0_i32 = arith.constant 0 : i32
    %c0_i32_0 = arith.constant 0 : i32
    %c0_i32_1 = arith.constant 0 : i32
    return %c0_i32, %c0_i32_0 : i32, i32
  }
  func.func @transform_7(%arg0: i32) -> (i32, i32) {
    %c0_i32 = arith.constant 0 : i32
    %c0_i32_0 = arith.constant 0 : i32
    %c0_i32_1 = arith.constant 0 : i32
    return %c0_i32, %c0_i32_0 : i32, i32
  }
  func.func @transform_8(%arg0: i32) -> (i32, i32) {
    %c0_i32 = arith.constant 0 : i32
    %c0_i32_0 = arith.constant 0 : i32
    %c0_i32_1 = arith.constant 0 : i32
    return %c0_i32, %c0_i32_0 : i32, i32
  }
  func.func @transform_9(%arg0: i32) -> (i32, i32) {
    %c0_i32 = arith.constant 0 : i32
    %c0_i32_0 = arith.constant 0 : i32
    %c0_i32_1 = arith.constant 0 : i32
    return %c0_i32, %c0_i32_0 : i32, i32
  }
  func.func @transform_10(%arg0: i32) -> (i32, i32) {
    %c0_i32 = arith.constant 0 : i32
    %c0_i32_0 = arith.constant 0 : i32
    %c0_i32_1 = arith.constant 0 : i32
    return %c0_i32, %c0_i32_0 : i32, i32
  }
  func.func @transform_13(%arg0: i32) -> (i32, i32) {
    %c0_i32 = arith.constant 0 : i32
    %c0_i32_0 = arith.constant 0 : i32
    %c0_i32_1 = arith.constant 0 : i32
    return %c0_i32, %c0_i32_0 : i32, i32
  }
}

</mosaic_0001>

<bundles_post_ra>
// kernel: d3qn_forward.1
= control target key start
LH: loop header
LB: loop body
LE: loop exit
PB: predicated region body
PF: predicated region fallthrough
CT: control target
= control target key end

     0   :  { %18 = vsyncpa [#allocation6], 0  ;;  %s6497_s0 = inlined_call_operand.vmem [shape: bf16[128,256], index: 0, kind: input, shape index: {}]   ;;  %s6498_s1 = inlined_call_operand.vmem [shape: bf16[256,32], index: 1, kind: input, shape index: {}]   ;;  %s6499_s2 = inlined_call_operand.vmem [shape: f32[1,32], index: 2, kind: input, shape index: {}]   ;;  %s6500_s3 = inlined_call_operand.vmem [shape: bf16[512,128], index: 3, kind: input, shape index: {}]   ;;  %s6501_s4 = inlined_call_operand.vmem [shape: bf16[512,64], index: 4, kind: input, shape index: {}]   ;;  %s6502_s5 = inlined_call_operand.vmem [shape: f32[1,64], index: 5, kind: input, shape index: {}]   ;;  %s6503_s6 = inlined_call_operand.vmem [shape: bf16[144,32], index: 6, kind: input, shape index: {}]   ;;  %s6504_s7 = inlined_call_operand.vmem [shape: bf16[576,64], index: 7, kind: input, shape index: {}]   ;;  %s6505_s8 = inlined_call_operand.vmem [shape: f32[1,64], index: 8, kind: input, shape index: {}]   ;;  %s6506_s9 = inlined_call_operand.vmem [shape: f32[1,1024], index: 9, kind: input, shape index: {}]   ;;  %s6507_s10 = inlined_call_operand.vmem [shape: f32[1,6], index: 10, kind: input, shape index: {}]   ;;  %s6508_s11 = inlined_call_operand.vmem [shape: bf16[64,1024], index: 11, kind: input, shape index: {}]   ;;  %s6509_s12 = inlined_call_operand.vmem [shape: bf16[1024,6], index: 12, kind: input, shape index: {}]   ;;  %s6510_s13 = inlined_call_operand.hbm [shape: f32[2,6], index: 13, kind: output, shape index: {}]  }
   0x1   :  { %v59_v0 = vld [vmem:[%s6508_s11] sm:$0xf]  ;;  %v63_v2 = vld [vmem:[%s6508_s11 + $0x4] sm:$0xf]  ;;  %v67_v4 = vld [vmem:[%s6508_s11 + $0x8] sm:$0xf] }
   0x2   :  { %v61_v1 = vld [vmem:[%s6508_s11 + $0x20] sm:$0xf]  ;;  %60 = vst [vmem:[#allocation2] sm:$0xf] %v59_v0  ;;  %v65_v3 = vld [vmem:[%s6508_s11 + $0x24] sm:$0xf] }
   0x3   :  { %62 = vst [vmem:[#allocation2 + $0x4] sm:$0xf] %v61_v1  ;;  %64 = vst [vmem:[#allocation2 + $0x8] sm:$0xf] %v63_v2  ;;  %v69_v5 = vld [vmem:[%s6508_s11 + $0x28] sm:$0xf] }
   0x4   :  { %66 = vst [vmem:[#allocation2 + $0xc] sm:$0xf] %v65_v3  ;;  %68 = vst [vmem:[#allocation2 + $0x10] sm:$0xf] %v67_v4  ;;  %v71_v6 = vld [vmem:[%s6508_s11 + $0xc] sm:$0xf] }
   0x5   :  { %v73_v7 = vld [vmem:[%s6508_s11 + $0x2c] sm:$0xf]  ;;  %70 = vst [vmem:[#allocation2 + $0x14] sm:$0xf] %v69_v5  ;;  %72 = vst [vmem:[#allocation2 + $0x18] sm:$0xf] %v71_v6 }
   0x6   :  { %74 = vst [vmem:[#allocation2 + $0x1c] sm:$0xf] %v73_v7  ;;  %v75_v8 = vld [vmem:[%s6508_s11 + $0x10] sm:$0xf]  ;;  %v79_v10 = vld [vmem:[%s6508_s11 + $0x14] sm:$0xf] }
   0x7   :  { %v77_v9 = vld [vmem:[%s6508_s11 + $0x30] sm:$0xf]  ;;  %76 = vst [vmem:[#allocation2 + $0x20] sm:$0xf] %v75_v8  ;;  %80 = vst [vmem:[#allocation2 + $0x28] sm:$0xf] %v79_v10 }
   0x8   :  { %78 = vst [vmem:[#allocation2 + $0x24] sm:$0xf] %v77_v9  ;;  %v81_v11 = vld [vmem:[%s6508_s11 + $0x34] sm:$0xf]  ;;  %v83_v12 = vld [vmem:[%s6508_s11 + $0x18] sm:$0xf] }
   0x9   :  { %v85_v13 = vld [vmem:[%s6508_s11 + $0x38] sm:$0xf]  ;;  %82 = vst [vmem:[#allocation2 + $0x2c] sm:$0xf] %v81_v11  ;;  %84 = vst [vmem:[#allocation2 + $0x30] sm:$0xf] %v83_v12 }
   0xa   :  { %86 = vst [vmem:[#allocation2 + $0x34] sm:$0xf] %v85_v13  ;;  %v87_v14 = vld [vmem:[%s6508_s11 + $0x1c] sm:$0xf]  ;;  %v93_v16 = vld [vmem:[%s6508_s11 + $0x60] sm:$0xf] }
   0xb   :  { %v89_v15 = vld [vmem:[%s6508_s11 + $0x3c] sm:$0xff]   ;;  %88 = vst [vmem:[#allocation2 + $0x38] sm:$0xf] %v87_v14  ;;  %94 = vst [vmem:[#allocation2 + $0x44] sm:$0xf] %v93_v16 }
   0xc   :  { %90 = vst [vmem:[#allocation2 + $0x3c] sm:$0xff] %v89_v15   ;;  %v95_v17 = vld [vmem:[%s6508_s11 + $0x44] sm:$0xf]  ;;  %v99_v19 = vld [vmem:[%s6508_s11 + $0x48] sm:$0xf]  ;;  %v121_v30 = vld [vmem:[%s6508_s11 + $0x7c] sm:$0xff]  }
   0xd   :  { %v97_v18 = vld [vmem:[%s6508_s11 + $0x64] sm:$0xf]  ;;  %96 = vst [vmem:[#allocation2 + $0x48] sm:$0xf] %v95_v17  ;;  %100 = vst [vmem:[#allocation2 + $0x50] sm:$0xf] %v99_v19 }
   0xe   :  { %98 = vst [vmem:[#allocation2 + $0x4c] sm:$0xf] %v97_v18  ;;  %v101_v20 = vld [vmem:[%s6508_s11 + $0x68] sm:$0xf]  ;;  %v103_v21 = vld [vmem:[%s6508_s11 + $0x4c] sm:$0xf] }
   0xf   :  { %v105_v22 = vld [vmem:[%s6508_s11 + $0x6c] sm:$0xf]  ;;  %102 = vst [vmem:[#allocation2 + $0x54] sm:$0xf] %v101_v20  ;;  %104 = vst [vmem:[#allocation2 + $0x58] sm:$0xf] %v103_v21 }
  0x10   :  { %106 = vst [vmem:[#allocation2 + $0x5c] sm:$0xf] %v105_v22  ;;  %v107_v23 = vld [vmem:[%s6508_s11 + $0x50] sm:$0xf]  ;;  %v111_v25 = vld [vmem:[%s6508_s11 + $0x54] sm:$0xf] }
  0x11   :  { %v109_v24 = vld [vmem:[%s6508_s11 + $0x70] sm:$0xf]  ;;  %108 = vst [vmem:[#allocation2 + $0x60] sm:$0xf] %v107_v23  ;;  %112 = vst [vmem:[#allocation2 + $0x68] sm:$0xf] %v111_v25 }
  0x12   :  { %110 = vst [vmem:[#allocation2 + $0x64] sm:$0xf] %v109_v24  ;;  %v113_v26 = vld [vmem:[%s6508_s11 + $0x74] sm:$0xf]  ;;  %v115_v27 = vld [vmem:[%s6508_s11 + $0x58] sm:$0xf] }
  0x13   :  { %v117_v28 = vld [vmem:[%s6508_s11 + $0x78] sm:$0xf]  ;;  %114 = vst [vmem:[#allocation2 + $0x6c] sm:$0xf] %v113_v26  ;;  %116 = vst [vmem:[#allocation2 + $0x70] sm:$0xf] %v115_v27 }
  0x14   :  { %118 = vst [vmem:[#allocation2 + $0x74] sm:$0xf] %v117_v28  ;;  %v119_v29 = vld [vmem:[%s6508_s11 + $0x5c] sm:$0xf]  ;;  %v125_v31 = vld [vmem:[%s6508_s11 + $0xa0] sm:$0xf] }
  0x15   :  { %120 = vst [vmem:[#allocation2 + $0x78] sm:$0xf] %v119_v29  ;;  %122 = vst [vmem:[#allocation2 + $0x7c] sm:$0xff] %v121_v30   ;;  %v127_v32 = vld [vmem:[%s6508_s11 + $0x84] sm:$0xf]  ;;  %v153_v45 = vld [vmem:[%s6508_s11 + $0xbc] sm:$0xff]  }
  0x16   :  { %126 = vst [vmem:[#allocation2 + $0x84] sm:$0xf] %v125_v31  ;;  %v129_v33 = vld [vmem:[%s6508_s11 + $0xa4] sm:$0xf]  ;;  %v131_v34 = vld [vmem:[%s6508_s11 + $0x88] sm:$0xf] }
  0x17   :  { %128 = vst [vmem:[#allocation2 + $0x88] sm:$0xf] %v127_v32  ;;  %130 = vst [vmem:[#allocation2 + $0x8c] sm:$0xf] %v129_v33  ;;  %v133_v35 = vld [vmem:[%s6508_s11 + $0xa8] sm:$0xf] }
  0x18   :  { %132 = vst [vmem:[#allocation2 + $0x90] sm:$0xf] %v131_v34  ;;  %v135_v36 = vld [vmem:[%s6508_s11 + $0x8c] sm:$0xf]  ;;  %134 = vst [vmem:[#allocation2 + $0x94] sm:$0xf] %v133_v35 }
  0x19   :  { %v137_v37 = vld [vmem:[%s6508_s11 + $0xac] sm:$0xf]  ;;  %136 = vst [vmem:[#allocation2 + $0x98] sm:$0xf] %v135_v36  ;;  %v139_v38 = vld [vmem:[%s6508_s11 + $0x90] sm:$0xf] }
  0x1a   :  { %138 = vst [vmem:[#allocation2 + $0x9c] sm:$0xf] %v137_v37  ;;  %v141_v39 = vld [vmem:[%s6508_s11 + $0xb0] sm:$0xf]  ;;  %v143_v40 = vld [vmem:[%s6508_s11 + $0x94] sm:$0xf] }
  0x1b   :  { %140 = vst [vmem:[#allocation2 + $0xa0] sm:$0xf] %v139_v38  ;;  %142 = vst [vmem:[#allocation2 + $0xa4] sm:$0xf] %v141_v39  ;;  %v145_v41 = vld [vmem:[%s6508_s11 + $0xb4] sm:$0xf] }
  0x1c   :  { %144 = vst [vmem:[#allocation2 + $0xa8] sm:$0xf] %v143_v40  ;;  %v147_v42 = vld [vmem:[%s6508_s11 + $0x98] sm:$0xf]  ;;  %146 = vst [vmem:[#allocation2 + $0xac] sm:$0xf] %v145_v41 }
  0x1d   :  { %v149_v43 = vld [vmem:[%s6508_s11 + $0xb8] sm:$0xf]  ;;  %148 = vst [vmem:[#allocation2 + $0xb0] sm:$0xf] %v147_v42  ;;  %v151_v44 = vld [vmem:[%s6508_s11 + $0x9c] sm:$0xf] }
  0x1e   :  { %150 = vst [vmem:[#allocation2 + $0xb4] sm:$0xf] %v149_v43  ;;  %v157_v46 = vld [vmem:[%s6508_s11 + $0xe0] sm:$0xf]  ;;  %152 = vst [vmem:[#allocation2 + $0xb8] sm:$0xf] %v151_v44 }
  0x1f   :  { %154 = vst [vmem:[#allocation2 + $0xbc] sm:$0xff] %v153_v45   ;;  %158 = vst [vmem:[#allocation2 + $0xc4] sm:$0xf] %v157_v46  ;;  %v159_v47 = vld [vmem:[%s6508_s11 + $0xc4] sm:$0xf] }
  0x20   :  { %v161_v48 = vld [vmem:[%s6508_s11 + $0xe4] sm:$0xf]  ;;  %v163_v49 = vld [vmem:[%s6508_s11 + $0xc8] sm:$0xf]  ;;  %160 = vst [vmem:[#allocation2 + $0xc8] sm:$0xf] %v159_v47 }
  0x21   :  { %162 = vst [vmem:[#allocation2 + $0xcc] sm:$0xf] %v161_v48  ;;  %164 = vst [vmem:[#allocation2 + $0xd0] sm:$0xf] %v163_v49  ;;  %v165_v50 = vld [vmem:[%s6508_s11 + $0xe8] sm:$0xf] }
  0x22   :  { %v167_v51 = vld [vmem:[%s6508_s11 + $0xcc] sm:$0xf]  ;;  %166 = vst [vmem:[#allocation2 + $0xd4] sm:$0xf] %v165_v50  ;;  %v171_v53 = vld [vmem:[%s6508_s11 + $0xd0] sm:$0xf] }
  0x23   :  { %v169_v52 = vld [vmem:[%s6508_s11 + $0xec] sm:$0xf]  ;;  %168 = vst [vmem:[#allocation2 + $0xd8] sm:$0xf] %v167_v51  ;;  %v173_v54 = vld [vmem:[%s6508_s11 + $0xf0] sm:$0xf] }
  0x24   :  { %170 = vst [vmem:[#allocation2 + $0xdc] sm:$0xf] %v169_v52  ;;  %v175_v55 = vld [vmem:[%s6508_s11 + $0xd4] sm:$0xf]  ;;  %172 = vst [vmem:[#allocation2 + $0xe0] sm:$0xf] %v171_v53 }
  0x25   :  { %174 = vst [vmem:[#allocation2 + $0xe4] sm:$0xf] %v173_v54  ;;  %176 = vst [vmem:[#allocation2 + $0xe8] sm:$0xf] %v175_v55  ;;  %v177_v56 = vld [vmem:[%s6508_s11 + $0xf4] sm:$0xf] }
  0x26   :  { %v179_v57 = vld [vmem:[%s6508_s11 + $0xd8] sm:$0xf]  ;;  %178 = vst [vmem:[#allocation2 + $0xec] sm:$0xf] %v177_v56  ;;  %v183_v59 = vld [vmem:[%s6508_s11 + $0xdc] sm:$0xf] }
  0x27   :  { %v181_v58 = vld [vmem:[%s6508_s11 + $0xf8] sm:$0xf]  ;;  %180 = vst [vmem:[#allocation2 + $0xf0] sm:$0xf] %v179_v57  ;;  %v185_v60 = vld [vmem:[%s6508_s11 + $0xfc] sm:$0xf] }
  0x28   :  { %182 = vst [vmem:[#allocation2 + $0xf4] sm:$0xf] %v181_v58  ;;  %184 = vst [vmem:[#allocation2 + $0xf8] sm:$0xf] %v183_v59 }
  0x29   :  { %186 = vst [vmem:[#allocation2 + $0xfc] sm:$0xf] %v185_v60 }
  0x2a   :  { %345 = vsyncadd [#allocation4], 4096  ;;  %v5502_v61 = vld [vmem:[%s6509_s12] sm:$0xff]  ;;  %v5507_v62 = vld [vmem:[%s6509_s12 + $0x8] sm:$0xff] }
  0x2b   :  { %v5512_v63 = vld [vmem:[%s6509_s12 + $0x10] sm:$0xff]  ;;  %v5517_v0 = vld [vmem:[%s6509_s12 + $0x18] sm:$0xff]  ;;  %v5522_v1 = vld [vmem:[%s6509_s12 + $0x20] sm:$0xff] }
  0x2c   :  { %v5527_v2 = vld [vmem:[%s6509_s12 + $0x28] sm:$0xff]  ;;  %v5532_v3 = vld [vmem:[%s6509_s12 + $0x30] sm:$0xff]  ;;  %v5537_v4 = vld [vmem:[%s6509_s12 + $0x38] sm:$0xff] }
  0x2d   :  { %v5542_v5 = vld [vmem:[%s6509_s12 + $0x40] sm:$0xff]  ;;  %v5547_v6 = vld [vmem:[%s6509_s12 + $0x48] sm:$0xff]  ;;  %v5552_v7 = vld [vmem:[%s6509_s12 + $0x50] sm:$0xff] }
  0x2e   :  { %v5557_v8 = vld [vmem:[%s6509_s12 + $0x58] sm:$0xff]  ;;  %v5562_v9 = vld [vmem:[%s6509_s12 + $0x60] sm:$0xff]  ;;  %v5567_v10 = vld [vmem:[%s6509_s12 + $0x68] sm:$0xff] }
  0x2f   :  { %v5572_v11 = vld [vmem:[%s6509_s12 + $0x70] sm:$0xff]  ;;  %v5577_v12 = vld [vmem:[%s6509_s12 + $0x78] sm:$0xff]  ;;  %v5582_v13 = vld [vmem:[%s6509_s12 + $0x80] sm:$0xff] }
  0x30   :  { %v5587_v14 = vld [vmem:[%s6509_s12 + $0x88] sm:$0xff]  ;;  %v5592_v15 = vld [vmem:[%s6509_s12 + $0x90] sm:$0xff]  ;;  %v5597_v16 = vld [vmem:[%s6509_s12 + $0x98] sm:$0xff] }
  0x31   :  { %v5602_v17 = vld [vmem:[%s6509_s12 + $0xa0] sm:$0xff]  ;;  %v5607_v18 = vld [vmem:[%s6509_s12 + $0xa8] sm:$0xff]  ;;  %v5612_v19 = vld [vmem:[%s6509_s12 + $0xb0] sm:$0xff] }
  0x32   :  { %v5617_v20 = vld [vmem:[%s6509_s12 + $0xb8] sm:$0xff]  ;;  %v5622_v21 = vld [vmem:[%s6509_s12 + $0xc0] sm:$0xff]  ;;  %v5627_v22 = vld [vmem:[%s6509_s12 + $0xc8] sm:$0xff] }
  0x33   :  { %v5632_v23 = vld [vmem:[%s6509_s12 + $0xd0] sm:$0xff]  ;;  %v5637_v24 = vld [vmem:[%s6509_s12 + $0xd8] sm:$0xff]  ;;  %v5642_v25 = vld [vmem:[%s6509_s12 + $0xe0] sm:$0xff] }
  0x34   :  { %v5647_v26 = vld [vmem:[%s6509_s12 + $0xe8] sm:$0xff]  ;;  %v5652_v27 = vld [vmem:[%s6509_s12 + $0xf0] sm:$0xff]  ;;  %v5657_v28 = vld [vmem:[%s6509_s12 + $0xf8] sm:$0xff] }
  0x35   :  { %v5662_v29 = vld [vmem:[%s6509_s12 + $0x100] sm:$0xff]  ;;  %v5667_v30 = vld [vmem:[%s6509_s12 + $0x108] sm:$0xff]  ;;  %v5672_v31 = vld [vmem:[%s6509_s12 + $0x110] sm:$0xff] }
  0x36   :  { %6513 = vst [vmem:[#allocation12_spill] sm:$0xff] %v5662_v29  ;;  %6514 = vst [vmem:[#allocation13_spill] sm:$0xff] %v5667_v30  ;;  %v5677_v32 = vld [vmem:[%s6509_s12 + $0x118] sm:$0xff]  ;;  %v5682_v33 = vld [vmem:[%s6509_s12 + $0x120] sm:$0xff] }
  0x37   :  { %6515 = vst [vmem:[#allocation14_spill] sm:$0xff] %v5672_v31  ;;  %6516 = vst [vmem:[#allocation15_spill] sm:$0xff] %v5677_v32  ;;  %v5687_v34 = vld [vmem:[%s6509_s12 + $0x128] sm:$0xff]  ;;  %v5692_v35 = vld [vmem:[%s6509_s12 + $0x130] sm:$0xff] }
  0x38   :  { %6517 = vst [vmem:[#allocation16_spill] sm:$0xff] %v5682_v33  ;;  %6518 = vst [vmem:[#allocation17_spill] sm:$0xff] %v5687_v34  ;;  %v5697_v36 = vld [vmem:[%s6509_s12 + $0x138] sm:$0xff]  ;;  %v5702_v37 = vld [vmem:[%s6509_s12 + $0x140] sm:$0xff] }
  0x39   :  { %6519 = vst [vmem:[#allocation18_spill] sm:$0xff] %v5692_v35  ;;  %6520 = vst [vmem:[#allocation19_spill] sm:$0xff] %v5697_v36  ;;  %v5707_v38 = vld [vmem:[%s6509_s12 + $0x148] sm:$0xff]  ;;  %v5712_v39 = vld [vmem:[%s6509_s12 + $0x150] sm:$0xff] }
  0x3a   :  { %6521 = vst [vmem:[#allocation20_spill] sm:$0xff] %v5707_v38  ;;  %6522 = vst [vmem:[#allocation21_spill] sm:$0xff] %v5712_v39  ;;  %v5717_v40 = vld [vmem:[%s6509_s12 + $0x158] sm:$0xff]  ;;  %v5722_v41 = vld [vmem:[%s6509_s12 + $0x160] sm:$0xff] }
  0x3b   :  { %6523 = vst [vmem:[#allocation22_spill] sm:$0xff] %v5717_v40  ;;  %6524 = vst [vmem:[#allocation23_spill] sm:$0xff] %v5722_v41  ;;  %v5727_v42 = vld [vmem:[%s6509_s12 + $0x168] sm:$0xff]  ;;  %v5732_v43 = vld [vmem:[%s6509_s12 + $0x170] sm:$0xff] }
  0x3c   :  { %6525 = vst [vmem:[#allocation24_spill] sm:$0xff] %v5727_v42  ;;  %6526 = vst [vmem:[#allocation25_spill] sm:$0xff] %v5732_v43  ;;  %v5737_v44 = vld [vmem:[%s6509_s12 + $0x178] sm:$0xff]  ;;  %v5742_v45 = vld [vmem:[%s6509_s12 + $0x180] sm:$0xff] }
  0x3d   :  { %6527 = vst [vmem:[#allocation26_spill] sm:$0xff] %v5737_v44  ;;  %6528 = vst [vmem:[#allocation27_spill] sm:$0xff] %v5742_v45  ;;  %v5747_v46 = vld [vmem:[%s6509_s12 + $0x188] sm:$0xff]  ;;  %v5752_v47 = vld [vmem:[%s6509_s12 + $0x190] sm:$0xff] }
  0x3e   :  { %6529 = vst [vmem:[#allocation28_spill] sm:$0xff] %v5747_v46  ;;  %6530 = vst [vmem:[#allocation29_spill] sm:$0xff] %v5752_v47  ;;  %v5757_v48 = vld [vmem:[%s6509_s12 + $0x198] sm:$0xff]  ;;  %v5762_v49 = vld [vmem:[%s6509_s12 + $0x1a0] sm:$0xff] }
  0x3f   :  { %6531 = vst [vmem:[#allocation30_spill] sm:$0xff] %v5757_v48  ;;  %6532 = vst [vmem:[#allocation31_spill] sm:$0xff] %v5762_v49  ;;  %v5767_v50 = vld [vmem:[%s6509_s12 + $0x1a8] sm:$0xff]  ;;  %v5772_v51 = vld [vmem:[%s6509_s12 + $0x1b0] sm:$0xff] }
  0x40   :  { %6533 = vst [vmem:[#allocation32_spill] sm:$0xff] %v5767_v50  ;;  %6534 = vst [vmem:[#allocation33_spill] sm:$0xff] %v5772_v51  ;;  %v5777_v52 = vld [vmem:[%s6509_s12 + $0x1b8] sm:$0xff]  ;;  %v5782_v53 = vld [vmem:[%s6509_s12 + $0x1c0] sm:$0xff] }
  0x41   :  { %6535 = vst [vmem:[#allocation34_spill] sm:$0xff] %v5777_v52  ;;  %v5787_v54 = vld [vmem:[%s6509_s12 + $0x1c8] sm:$0xff]  ;;  %v5792_v55 = vld [vmem:[%s6509_s12 + $0x1d0] sm:$0xff]  ;;  %v5797_v56 = vld [vmem:[%s6509_s12 + $0x1d8] sm:$0xff] }
  0x42   :  { %6536 = vst [vmem:[#allocation35_spill] sm:$0xff] %v5787_v54  ;;  %6537 = vst [vmem:[#allocation36_spill] sm:$0xff] %v5792_v55  ;;  %v5802_v57 = vld [vmem:[%s6509_s12 + $0x1e0] sm:$0xff]  ;;  %v5807_v58 = vld [vmem:[%s6509_s12 + $0x1e8] sm:$0xff] }
  0x43   :  { %6538 = vst [vmem:[#allocation37_spill] sm:$0xff] %v5797_v56  ;;  %6539 = vst [vmem:[#allocation38_spill] sm:$0xff] %v5802_v57  ;;  %v5812_v59 = vld [vmem:[%s6509_s12 + $0x1f0] sm:$0xff]  ;;  %v5817_v60 = vld [vmem:[%s6509_s12 + $0x1f8] sm:$0xff] }
  0x44   :  { %6540 = vst [vmem:[#allocation39_spill] sm:$0xff] %v5807_v58  ;;  %6541 = vst [vmem:[#allocation40_spill] sm:$0xff] %v5812_v59 }
  0x45   :  { %6542 = vst [vmem:[#allocation41_spill] sm:$0xff] %v5817_v60 }
  0x46   :  { %514 = vsyncadd [#allocation4 + $0x1], 8192  ;;  %v5065_v52 = vld [vmem:[%s6498_s1 + $0x40] sm:$0xff]   ;;  %v5067_v44 = vld [vmem:[%s6498_s1 + $0x48] sm:$0xff]   ;;  %vm1464_vm0 = vcmask 261120   ;;  %vm5243_vm1 = vmmov 0  }
  0x47   :  { %v5066_v36 = vld [vmem:[%s6498_s1] sm:$0xff]   ;;  %4333 = vmatprep.subr.bf16.mxu0 %v5065_v52  ;;  %v5068_v51 = vld [vmem:[%s6498_s1 + $0x8] sm:$0xff]   ;;  %v5069_v60 = vld [vmem:[%s6498_s1 + $0x50] sm:$0xff]   ;;  %v6543_v39 = vmov 0.0   ;;  %vm2898_vm2 = vcmask 523264  }
  0x48   :  { %4334 = vmatpush3.bf16.msra.mxu0 %v5066_v36  ;;  %v5070_v35 = vld [vmem:[%s6498_s1 + $0x10] sm:$0xff]   ;;  %v5071_v52 = vld [vmem:[%s6498_s1 + $0x58] sm:$0xff]  }
  0x49   :  { %4335 = vmatprep.subr.bf16.mxu0 %v5067_v44  ;;  %v5072_v36 = vld [vmem:[%s6498_s1 + $0x18] sm:$0xff]   ;;  %v5073_v44 = vld [vmem:[%s6498_s1 + $0x60] sm:$0xff]  }
  0x4c   :  { %4336 = vmatpush3.bf16.msra.mxu0 %v5068_v51  ;;  %v5074_v51 = vld [vmem:[%s6498_s1 + $0x20] sm:$0xff]  }
  0x4d   :  { %4337 = vmatprep.subr.bf16.mxu0 %v5069_v60  ;;  %v5075_v60 = vld [vmem:[%s6498_s1 + $0x68] sm:$0xff]  }
  0x50   :  { %4338 = vmatpush3.bf16.msra.mxu0 %v5070_v35  ;;  %v5083_v35 = vld [vmem:[%s6497_s0 + $0x4] ss:$8 sps:$4 sm:$0xff]  }
  0x51   :  { %4339 = vmatprep.subr.bf16.mxu0 %v5071_v52  ;;  %778 = vmatprep.mubr.bf16.mxu0 %v5083_v35  ;;  %v5076_v52 = vld [vmem:[%s6498_s1 + $0x28] sm:$0xff]   ;;  %v5079_v35 = vld [vmem:[%s6498_s1 + $0x78] sm:$0xff]  }
  0x54   :  { %4340 = vmatpush3.bf16.msra.mxu0 %v5072_v36  ;;  %v5077_v36 = vld [vmem:[%s6498_s1 + $0x70] sm:$0xff]  }
  0x55   :  { %4341 = vmatprep.subr.bf16.mxu0 %v5073_v44  ;;  %v5078_v44 = vld [vmem:[%s6498_s1 + $0x30] sm:$0xff]  }
  0x58   :  { %4342 = vmatpush3.bf16.msra.mxu0 %v5074_v51  ;;  %v5080_v51 = vld [vmem:[%s6498_s1 + $0x38] sm:$0xff]  }
  0x59   :  { %4343 = vmatprep.subr.bf16.mxu0 %v5075_v60  ;;  %v5081_v60 = vld [vmem:[%s6497_s0] ss:$8 sps:$4 sm:$0xff]  }
  0x5c   :  { %4344 = vmatpush3.bf16.msra.mxu0 %v5076_v52  ;;  %v5084_v52 = vld [vmem:[%s6497_s0 + $0x14] ss:$8 sps:$4 sm:$0xff]  }
  0x5d   :  { %4345 = vmatprep.subr.bf16.mxu0 %v5077_v36  ;;  %v5086_v36 = vld [vmem:[%s6497_s0 + $0x10] ss:$8 sps:$4 sm:$0xff]  }
  0x60   :  { %4346 = vmatpush3.bf16.msra.mxu0 %v5078_v44  ;;  %v5087_v44 = vld [vmem:[%s6497_s0 + $0x24] ss:$8 sps:$4 sm:$0xff]  }
  0x61   :  { %4347 = vmatprep.subr.bf16.mxu0 %v5079_v35  ;;  %v5089_v35 = vld [vmem:[%s6497_s0 + $0x20] ss:$8 sps:$4 sm:$0xff]  }
  0x64   :  { %4348 = vmatpush3.bf16.msra.mxu0 %v5080_v51  ;;  %v5090_v51 = vld [vmem:[%s6497_s0 + $0x34] ss:$8 sps:$4 sm:$0xff]  }
  0x67   :  { %779 = vmatmul.mubr.bf16.vlgmr.msra.gmra.mrb[0].mxu0 %v5081_v60  ;;  %v5092_v60 = vld [vmem:[%s6497_s0 + $0x30] ss:$8 sps:$4 sm:$0xff]  }
  0x68   :  { %786 = vmatprep.mubr.bf16.mxu0 %v5084_v52  ;;  %v5093_v52 = vld [vmem:[%s6497_s0 + $0x44] ss:$8 sps:$4 sm:$0xff]  }
  0x6f   :  { %787 = vmatmul.mubr.bf16.gmra.mrb[4].mxu0 %v5086_v36  ;;  %v5095_v36 = vld [vmem:[%s6497_s0 + $0x40] ss:$8 sps:$4 sm:$0xff]  }
  0x70   :  { %794 = vmatprep.mubr.bf16.mxu0 %v5087_v44  ;;  %v5096_v44 = vld [vmem:[%s6497_s0 + $0x54] ss:$8 sps:$4 sm:$0xff]  }
  0x77   :  { %795 = vmatmul.mubr.bf16.gmra.mrb[8].mxu0 %v5089_v35  ;;  %v5098_v35 = vld [vmem:[%s6497_s0 + $0x50] ss:$8 sps:$4 sm:$0xff]  }
  0x78   :  { %802 = vmatprep.mubr.bf16.mxu0 %v5090_v51  ;;  %v5099_v51 = vld [vmem:[%s6497_s0 + $0x64] ss:$8 sps:$4 sm:$0xff]  }
  0x7f   :  { %803 = vmatmul.mubr.bf16.gmra.mrb[12].mxu0 %v5092_v60  ;;  %v5101_v60 = vld [vmem:[%s6497_s0 + $0x60] ss:$8 sps:$4 sm:$0xff]  }
  0x80   :  { %810 = vmatprep.mubr.bf16.mxu0 %v5093_v52  ;;  %v5102_v52 = vld [vmem:[%s6497_s0 + $0x74] ss:$8 sps:$4 sm:$0xff]  }
  0x87   :  { %811 = vmatmul.mubr.bf16.gmra.mrb[16].mxu0 %v5095_v36  ;;  %v5104_v36 = vld [vmem:[%s6497_s0 + $0x70] ss:$8 sps:$4 sm:$0xff]  }
  0x88   :  { %818 = vmatprep.mubr.bf16.mxu0 %v5096_v44  ;;  %v5105_v44 = vld [vmem:[%s6500_s3] sm:$0xff]  }
  0x89   :  { %4661 = vmatprep.mubr.bf16.mxu1 %v5105_v44 }
  0x8f   :  { %819 = vmatmul.mubr.bf16.gmra.mrb[20].mxu0 %v5098_v35 }
  0x90   :  { %826 = vmatprep.mubr.bf16.mxu0 %v5099_v51  ;;  %v5921_v51 = vld [vmem:[%s6499_s2] ss:$0 sm:$0xff] }
  0x97   :  { %827 = vmatmul.mubr.bf16.gmra.mrb[24].mxu0 %v5101_v60 }
  0x98   :  { %834 = vmatprep.mubr.bf16.mxu0 %v5102_v52 }
  0x9f   :  { %835 = vmatmul.mubr.bf16.gmra.mrb[28].mxu0 %v5104_v36 }
 0x13a   :  { %v4349_v35 = vpop.f32.mrb[0].mxu0 }
 0x13b   :  { %v4350_v59 = vpop.f32.mrb[1].mxu0 }
 0x13c   :  { %v4351_v43 = vadd.f32 %v4350_v59, %v4349_v35  ;;  %v4352_v60 = vpop.f32.mrb[2].mxu0 }
 0x13d   :  { %v4353_v52 = vpop.f32.mrb[3].mxu0 }
 0x13e   :  { %v781_v50 = vadd.f32 %v4351_v43, %v5921_v51  ;;  %v4354_v34 = vadd.f32 %v4353_v52, %v4352_v60 }
 0x140   :  { %v784_v36 = vadd.f32 %v4354_v34, %v5921_v51  ;;  %v843_v58 = vmax.f32 %v781_v50, 0.0 }
 0x142   :  { %v844_v42 = vmax.f32 %v784_v36, 0.0  ;;  %v4355_v49 = vpop.f32.mrb[4].mxu0 }
 0x143   :  { %v4356_v33 = vpop.f32.mrb[5].mxu0 }
 0x144   :  { %v4357_v44 = vadd.f32 %v4356_v33, %v4355_v49  ;;  %v4358_v57 = vpop.f32.mrb[6].mxu0  ;;  %v859_v41 = vpack.c.bf16 %v844_v42, %v843_v58 }
 0x145   :  { %v4359_v48 = vpop.f32.mrb[7].mxu0 }
 0x146   :  { %v789_v32 = vadd.f32 %v4357_v44, %v5921_v51  ;;  %v4360_v56 = vadd.f32 %v4359_v48, %v4358_v57  ;;  %4645 = vmatprep.subr.bf16.mxu1 %v859_v41 }
 0x147   :  { %4646 = vmatpush3.bf16.msra.mxu1 %v859_v41 }
 0x148   :  { %v792_v59 = vadd.f32 %v4360_v56, %v5921_v51  ;;  %v845_v35 = vmax.f32 %v789_v32, 0.0 }
 0x14a   :  { %v846_v43 = vmax.f32 %v792_v59, 0.0  ;;  %v4361_v60 = vpop.f32.mrb[8].mxu0 }
 0x14b   :  { %v4362_v52 = vpop.f32.mrb[9].mxu0 }
 0x14c   :  { %v4363_v34 = vadd.f32 %v4362_v52, %v4361_v60  ;;  %v4364_v50 = vpop.f32.mrb[10].mxu0  ;;  %v860_v36 = vpack.c.bf16 %v846_v43, %v845_v35 }
 0x14d   :  { %v4365_v40 = vpop.f32.mrb[11].mxu0 }
 0x14e   :  { %v797_v33 = vadd.f32 %v4363_v34, %v5921_v51  ;;  %v4366_v49 = vadd.f32 %v4365_v40, %v4364_v50  ;;  %4647 = vmatprep.subr.bf16.mxu1 %v860_v36 }
 0x14f   :  { %4648 = vmatpush3.bf16.msra.mxu1 %v860_v36 }
 0x150   :  { %v800_v42 = vadd.f32 %v4366_v49, %v5921_v51  ;;  %v847_v48 = vmax.f32 %v797_v33, 0.0 }
 0x152   :  { %v848_v57 = vmax.f32 %v800_v42, 0.0  ;;  %v4367_v41 = vpop.f32.mrb[12].mxu0 }
 0x153   :  { %v4368_v58 = vpop.f32.mrb[13].mxu0 }
 0x154   :  { %v4369_v56 = vadd.f32 %v4368_v58, %v4367_v41  ;;  %v4370_v32 = vpop.f32.mrb[14].mxu0  ;;  %v861_v44 = vpack.c.bf16 %v848_v57, %v847_v48 }
 0x155   :  { %v4371_v59 = vpop.f32.mrb[15].mxu0 }
 0x156   :  { %v805_v60 = vadd.f32 %v4369_v56, %v5921_v51  ;;  %v4372_v52 = vadd.f32 %v4371_v59, %v4370_v32  ;;  %4649 = vmatprep.subr.bf16.mxu1 %v861_v44 }
 0x157   :  { %4650 = vmatpush3.bf16.msra.mxu1 %v861_v44 }
 0x158   :  { %v808_v35 = vadd.f32 %v4372_v52, %v5921_v51  ;;  %v849_v40 = vmax.f32 %v805_v60, 0.0 }
 0x15a   :  { %v850_v43 = vmax.f32 %v808_v35, 0.0  ;;  %v4373_v34 = vpop.f32.mrb[16].mxu0 }
 0x15b   :  { %v4374_v50 = vpop.f32.mrb[17].mxu0 }
 0x15c   :  { %v4375_v36 = vadd.f32 %v4374_v50, %v4373_v34  ;;  %v4376_v33 = vpop.f32.mrb[18].mxu0  ;;  %v862_v49 = vpack.c.bf16 %v850_v43, %v849_v40 }
 0x15d   :  { %v4377_v42 = vpop.f32.mrb[19].mxu0 }
 0x15e   :  { %v813_v41 = vadd.f32 %v4375_v36, %v5921_v51  ;;  %v4378_v58 = vadd.f32 %v4377_v42, %v4376_v33  ;;  %4651 = vmatprep.subr.bf16.mxu1 %v862_v49 }
 0x15f   :  { %4652 = vmatpush3.bf16.msra.mxu1 %v862_v49 }
 0x160   :  { %v816_v48 = vadd.f32 %v4378_v58, %v5921_v51  ;;  %v851_v57 = vmax.f32 %v813_v41, 0.0 }
 0x162   :  { %v852_v56 = vmax.f32 %v816_v48, 0.0  ;;  %v4379_v32 = vpop.f32.mrb[20].mxu0 }
 0x163   :  { %v4380_v44 = vpop.f32.mrb[21].mxu0 }
 0x164   :  { %v4381_v59 = vadd.f32 %v4380_v44, %v4379_v32  ;;  %v4382_v60 = vpop.f32.mrb[22].mxu0  ;;  %v863_v52 = vpack.c.bf16 %v852_v56, %v851_v57 }
 0x165   :  { %v4383_v35 = vpop.f32.mrb[23].mxu0 }
 0x166   :  { %v821_v34 = vadd.f32 %v4381_v59, %v5921_v51  ;;  %v4384_v50 = vadd.f32 %v4383_v35, %v4382_v60  ;;  %4653 = vmatprep.subr.bf16.mxu1 %v863_v52 }
 0x167   :  { %4654 = vmatpush3.bf16.msra.mxu1 %v863_v52  ;;  %v5135_v52 = vld [vmem:[%s6501_s4] sm:$0xff]  }
 0x168   :  { %v824_v40 = vadd.f32 %v4384_v50, %v5921_v51  ;;  %v853_v43 = vmax.f32 %v821_v34, 0.0  ;;  %4733 = vmatprep.subr.bf16.mxu0 %v5135_v52 }
 0x169   :  { %4734 = vmatpush3.bf16.msra.mxu0 %v5135_v52  ;;  %v5113_v52 = vld [vmem:[%s6500_s3 + $0x40] sm:$0xff]  }
 0x16a   :  { %v854_v36 = vmax.f32 %v824_v40, 0.0  ;;  %v4385_v33 = vpop.f32.mrb[24].mxu0 }
 0x16b   :  { %v4386_v49 = vpop.f32.mrb[25].mxu0 }
 0x16c   :  { %v4387_v42 = vadd.f32 %v4386_v49, %v4385_v33  ;;  %v4388_v41 = vpop.f32.mrb[26].mxu0  ;;  %v864_v58 = vpack.c.bf16 %v854_v36, %v853_v43 }
 0x16d   :  { %v4389_v48 = vpop.f32.mrb[27].mxu0 }
 0x16e   :  { %v829_v32 = vadd.f32 %v4387_v42, %v5921_v51  ;;  %v4390_v44 = vadd.f32 %v4389_v48, %v4388_v41  ;;  %4655 = vmatprep.subr.bf16.mxu1 %v864_v58 }
 0x16f   :  { %4656 = vmatpush3.bf16.msra.mxu1 %v864_v58  ;;  %v5138_v58 = vld [vmem:[%s6501_s4 + $0x8] sm:$0xff]  }
 0x170   :  { %v832_v57 = vadd.f32 %v4390_v44, %v5921_v51  ;;  %v855_v56 = vmax.f32 %v829_v32, 0.0  ;;  %4735 = vmatprep.subr.bf16.mxu0 %v5138_v58  ;;  %v5106_v32 = vld [vmem:[%s6500_s3 + $0x8] sm:$0xff]   ;;  %v5107_v44 = vld [vmem:[%s6500_s3 + $0x10] sm:$0xff]  }
 0x171   :  { %4736 = vmatpush3.bf16.msra.mxu0 %v5138_v58  ;;  %v5124_v58 = vld [vmem:[%s6500_s3 + $0x98] sm:$0xff]  }
 0x172   :  { %v856_v59 = vmax.f32 %v832_v57, 0.0  ;;  %v4391_v60 = vpop.f32.mrb[28].mxu0  ;;  %v5109_v57 = vld [vmem:[%s6500_s3 + $0x20] sm:$0xff]  }
 0x173   :  { %v4392_v35 = vpop.f32.mrb[29].mxu0 }
 0x174   :  { %v4393_v34 = vadd.f32 %v4392_v35, %v4391_v60  ;;  %v4394_v50 = vpop.f32.mrb[30].mxu0  ;;  %v865_v40 = vpack.c.bf16 %v856_v59, %v855_v56  ;;  %v5110_v56 = vld [vmem:[%s6500_s3 + $0x28] sm:$0xff]   ;;  %v5111_v59 = vld [vmem:[%s6500_s3 + $0x30] sm:$0xff]   ;;  %v5112_v60 = vld [vmem:[%s6500_s3 + $0x38] sm:$0xff]  }
 0x175   :  { %v4395_v43 = vpop.f32.mrb[31].mxu0  ;;  %v5114_v35 = vld [vmem:[%s6500_s3 + $0x48] sm:$0xff]  }
 0x176   :  { %v837_v36 = vadd.f32 %v4393_v34, %v5921_v51  ;;  %v4396_v33 = vadd.f32 %v4395_v43, %v4394_v50  ;;  %4657 = vmatprep.subr.bf16.mxu1 %v865_v40  ;;  %v5115_v34 = vld [vmem:[%s6500_s3 + $0x50] sm:$0xff]   ;;  %v5116_v50 = vld [vmem:[%s6500_s3 + $0x58] sm:$0xff]   ;;  %v5118_v43 = vld [vmem:[%s6500_s3 + $0x68] sm:$0xff]  }
 0x177   :  { %4658 = vmatpush3.bf16.msra.mxu1 %v865_v40  ;;  %v5117_v40 = vld [vmem:[%s6500_s3 + $0x60] sm:$0xff]  }
 0x178   :  { %v840_v49 = vadd.f32 %v4396_v33, %v5921_v51  ;;  %v857_v42 = vmax.f32 %v837_v36, 0.0  ;;  %v5108_v51 = vld [vmem:[%s6500_s3 + $0x18] sm:$0xff]   ;;  %v5119_v36 = vld [vmem:[%s6500_s3 + $0x70] sm:$0xff]  }
 0x179   :  { %v5120_v33 = vld [vmem:[%s6500_s3 + $0x78] sm:$0xff]  }
 0x17a   :  { %v858_v41 = vmax.f32 %v840_v49, 0.0  ;;  %v5121_v49 = vld [vmem:[%s6500_s3 + $0x80] sm:$0xff]  }
 0x17c   :  { %v866_v48 = vpack.c.bf16 %v858_v41, %v857_v42  ;;  %v5122_v42 = vld [vmem:[%s6500_s3 + $0x88] sm:$0xff]   ;;  %v5123_v41 = vld [vmem:[%s6500_s3 + $0x90] sm:$0xff]  }
 0x17e   :  { %4659 = vmatprep.subr.bf16.mxu1 %v866_v48 }
 0x17f   :  { %4660 = vmatpush3.bf16.msra.mxu1 %v866_v48  ;;  %v5125_v48 = vld [vmem:[%s6500_s3 + $0xa0] sm:$0xff]  }
 0x182   :  { %4662 = vmatmul.mubr.bf16.vlgmr.msra.gmra.mrb[0].mxu1 %v5106_v32  ;;  %v5126_v32 = vld [vmem:[%s6500_s3 + $0xa8] sm:$0xff]  }
 0x183   :  { %4665 = vmatprep.mubr.bf16.mxu1 %v5107_v44  ;;  %v5127_v44 = vld [vmem:[%s6500_s3 + $0xb0] sm:$0xff]  }
 0x18a   :  { %4666 = vmatmul.mubr.bf16.gmra.mrb[4].mxu1 %v5108_v51  ;;  %v5128_v51 = vld [vmem:[%s6500_s3 + $0xb8] sm:$0xff]  }
 0x18b   :  { %4669 = vmatprep.mubr.bf16.mxu1 %v5109_v57  ;;  %v5129_v57 = vld [vmem:[%s6500_s3 + $0xc0] sm:$0xff]  }
 0x192   :  { %4670 = vmatmul.mubr.bf16.gmra.mrb[8].mxu1 %v5110_v56  ;;  %v5139_v56 = vld [vmem:[%s6501_s4 + $0x10] sm:$0xff]  }
 0x193   :  { %4673 = vmatprep.mubr.bf16.mxu1 %v5111_v59  ;;  %4725 = vmatprep.subr.bf16.mxu1 %v5139_v56  ;;  %v5130_v59 = vld [vmem:[%s6500_s3 + $0xc8] sm:$0xff]  }
 0x194   :  { %4726 = vmatpush3.bf16.msra.mxu1 %v5139_v56 }
 0x19a   :  { %4674 = vmatmul.mubr.bf16.gmra.mrb[12].mxu1 %v5112_v60  ;;  %v5140_v60 = vld [vmem:[%s6501_s4 + $0x18] sm:$0xff]  }
 0x19b   :  { %4677 = vmatprep.mubr.bf16.mxu1 %v5113_v52  ;;  %v5131_v52 = vld [vmem:[%s6500_s3 + $0xd0] sm:$0xff]   ;;  %4727 = vmatprep.subr.bf16.mxu1 %v5140_v60 }
 0x19c   :  { %4728 = vmatpush3.bf16.msra.mxu1 %v5140_v60 }
 0x1a2   :  { %4678 = vmatmul.mubr.bf16.gmra.mrb[16].mxu1 %v5114_v35  ;;  %v5141_v35 = vld [vmem:[%s6501_s4 + $0x20] sm:$0xff]  }
 0x1a3   :  { %4681 = vmatprep.mubr.bf16.mxu1 %v5115_v34  ;;  %4741 = vmatprep.subr.bf16.mxu0 %v5141_v35  ;;  %v5132_v34 = vld [vmem:[%s6500_s3 + $0xd8] sm:$0xff]  }
 0x1aa   :  { %4682 = vmatmul.mubr.bf16.gmra.mrb[20].mxu1 %v5116_v50  ;;  %v5133_v50 = vld [vmem:[%s6500_s3 + $0xe0] sm:$0xff]  }
 0x1ab   :  { %4685 = vmatprep.mubr.bf16.mxu1 %v5117_v40  ;;  %v5134_v40 = vld [vmem:[%s6500_s3 + $0xe8] sm:$0xff]  }
 0x1b2   :  { %4686 = vmatmul.mubr.bf16.gmra.mrb[24].mxu1 %v5118_v43  ;;  %v5136_v43 = vld [vmem:[%s6500_s3 + $0xf0] sm:$0xff]  }
 0x1b3   :  { %4689 = vmatprep.mubr.bf16.mxu1 %v5119_v36  ;;  %v5137_v36 = vld [vmem:[%s6500_s3 + $0xf8] sm:$0xff]  }
 0x1ba   :  { %4690 = vmatmul.mubr.bf16.gmra.mrb[28].mxu1 %v5120_v33 }
 0x1bb   :  { %4693 = vmatprep.mubr.bf16.mxu1 %v5121_v49 }
 0x1c2   :  { %4694 = vmatmul.mubr.bf16.gmra.mrb[32].mxu1 %v5122_v42 }
 0x1c3   :  { %4697 = vmatprep.mubr.bf16.mxu1 %v5123_v41 }
 0x1ca   :  { %4698 = vmatmul.mubr.bf16.gmra.mrb[36].mxu1 %v5124_v58 }
 0x1cb   :  { %4701 = vmatprep.mubr.bf16.mxu1 %v5125_v48 }
 0x1d2   :  { %4702 = vmatmul.mubr.bf16.gmra.mrb[40].mxu1 %v5126_v32  ;;  %v5142_v32 = vld [vmem:[%s6501_s4 + $0x28] sm:$0xff]  }
 0x1d3   :  { %4705 = vmatprep.mubr.bf16.mxu1 %v5127_v44 }
 0x1da   :  { %4706 = vmatmul.mubr.bf16.gmra.mrb[44].mxu1 %v5128_v51 }
 0x1db   :  { %4709 = vmatprep.mubr.bf16.mxu1 %v5129_v57  ;;  %v5143_v57 = vld [vmem:[%s6501_s4 + $0x30] sm:$0xff]  }
 0x1e2   :  { %4710 = vmatmul.mubr.bf16.gmra.mrb[48].mxu1 %v5130_v59 }
 0x1e3   :  { %4713 = vmatprep.mubr.bf16.mxu1 %v5131_v52 }
 0x1ea   :  { %4714 = vmatmul.mubr.bf16.gmra.mrb[52].mxu1 %v5132_v34 }
 0x1eb   :  { %4717 = vmatprep.mubr.bf16.mxu1 %v5133_v50 }
 0x1f2   :  { %4718 = vmatmul.mubr.bf16.gmra.mrb[56].mxu1 %v5134_v40 }
 0x1f3   :  { %4721 = vmatprep.mubr.bf16.mxu1 %v5136_v43 }
 0x1fa   :  { %4722 = vmatmul.mubr.bf16.gmra.mrb[60].mxu1 %v5137_v36 }
 0x255   :  { %v4663_v33 = vpop.f32.mrb[0].mxu1 }
 0x256   :  { %v1157_v49 = vpop.f32.mrb[1].mxu1 }
 0x257   :  { %v4664_v42 = vpop.f32.mrb[2].mxu1 }
 0x258   :  { %v1413_v41 = vpack.c.bf16 %v4664_v42, %v4663_v33  ;;  %v1160_v58 = vpop.f32.mrb[3].mxu1  ;;  %v5144_v33 = vld [vmem:[%s6501_s4 + $0x38] sm:$0xff]  }
 0x259   :  { %v1412_v48 = vpack.c.bf16 %v1160_v58, %v1157_v49 }
 0x25b   :  { %4737 = vmatprep.mubr.msk.bf16.mxu0 %vm1464_vm0, %v1412_v48 }
 0x25c   :  { %4738 = vmatmul.mubr.msk.bf16.vlgmr.msra.gmra.mrb[32].mxu0 %vm1464_vm0, %v1413_v41  ;;  %v5145_v41 = vld [vmem:[%s6501_s4 + $0x40] sm:$0xff]  }
 0x25d   :  { %v4667_v44 = vpop.f32.mrb[4].mxu1  ;;  %4742 = vmatpush3.bf16.msra.mxu0 %v5141_v35 }
 0x25e   :  { %v1173_v51 = vpop.f32.mrb[5].mxu1  ;;  %4743 = vmatprep.subr.bf16.mxu0 %v5142_v32 }
 0x25f   :  { %v4668_v56 = vpop.f32.mrb[6].mxu1 }
 0x260   :  { %v1415_v59 = vpack.c.bf16 %v4668_v56, %v4667_v44  ;;  %v1176_v60 = vpop.f32.mrb[7].mxu1 }
 0x261   :  { %v1414_v52 = vpack.c.bf16 %v1176_v60, %v1173_v51  ;;  %4744 = vmatpush3.bf16.msra.mxu0 %v5142_v32 }
 0x262   :  { %4749 = vmatprep.subr.bf16.mxu0 %v5143_v57 }
 0x263   :  { %4729 = vmatprep.mubr.msk.bf16.mxu1 %vm1464_vm0, %v1414_v52 }
 0x264   :  { %4730 = vmatmul.mubr.msk.bf16.vlgmr.msra.gmra.mrb[64].mxu1 %vm1464_vm0, %v1415_v59 }
 0x265   :  { %v4671_v34 = vpop.f32.mrb[8].mxu1 }
 0x266   :  { %v1189_v50 = vpop.f32.mrb[9].mxu1 }
 0x267   :  { %v4672_v40 = vpop.f32.mrb[10].mxu1 }
 0x268   :  { %v1417_v35 = vpack.c.bf16 %v4672_v40, %v4671_v34  ;;  %v1192_v43 = vpop.f32.mrb[11].mxu1 }
 0x269   :  { %v1416_v36 = vpack.c.bf16 %v1192_v43, %v1189_v50  ;;  %v5147_v50 = vld [vmem:[%s6501_s4 + $0x50] sm:$0xff]  }
 0x26b   :  { %4745 = vmatprep.mubr.msk.bf16.mxu0 %vm1464_vm0, %v1416_v36 }
 0x26c   :  { %4746 = vmatmul.mubr.msk.bf16.vlgmr.msra.gmra.mrb[32].mxu0 %vm1464_vm0, %v1417_v35 }
 0x26d   :  { %4750 = vmatpush3.bf16.msra.mxu0 %v5143_v57  ;;  %v4675_v49 = vpop.f32.mrb[12].mxu1  ;;  %v5146_v57 = vld [vmem:[%s6501_s4 + $0x48] sm:$0xff]  }
 0x26e   :  { %v1205_v42 = vpop.f32.mrb[13].mxu1  ;;  %4751 = vmatprep.subr.bf16.mxu0 %v5144_v33 }
 0x26f   :  { %v4676_v58 = vpop.f32.mrb[14].mxu1 }
 0x270   :  { %v1419_v48 = vpack.c.bf16 %v4676_v58, %v4675_v49  ;;  %v1208_v32 = vpop.f32.mrb[15].mxu1  ;;  %v5149_v58 = vld [vmem:[%s6501_s4 + $0x60] sm:$0xff]  }
 0x271   :  { %v1418_v44 = vpack.c.bf16 %v1208_v32, %v1205_v42  ;;  %4752 = vmatpush3.bf16.msra.mxu0 %v5144_v33  ;;  %v5148_v42 = vld [vmem:[%s6501_s4 + $0x58] sm:$0xff]  }
 0x272   :  { %4757 = vmatprep.subr.bf16.mxu0 %v5145_v41 }
 0x273   :  { %4753 = vmatprep.mubr.msk.bf16.mxu0 %vm1464_vm0, %v1418_v44 }
 0x275   :  { %v4679_v51 = vpop.f32.mrb[16].mxu1 }
 0x276   :  { %v1221_v56 = vpop.f32.mrb[17].mxu1 }
 0x277   :  { %v4680_v59 = vpop.f32.mrb[18].mxu1 }
 0x278   :  { %4754 = vmatmul.mubr.msk.bf16.vlgmr.msra.gmra.mrb[32].mxu0 %vm1464_vm0, %v1419_v48  ;;  %v1421_v60 = vpack.c.bf16 %v4680_v59, %v4679_v51  ;;  %v1224_v52 = vpop.f32.mrb[19].mxu1  ;;  %v5150_v59 = vld [vmem:[%s6501_s4 + $0x68] sm:$0xff]  }
 0x279   :  { %4758 = vmatpush3.bf16.msra.mxu0 %v5145_v41  ;;  %v1420_v34 = vpack.c.bf16 %v1224_v52, %v1221_v56 }
 0x27a   :  { %4759 = vmatprep.subr.bf16.mxu0 %v5146_v57 }
 0x27b   :  { %4761 = vmatprep.mubr.msk.bf16.mxu0 %vm1464_vm0, %v1420_v34 }
 0x27d   :  { %4760 = vmatpush3.bf16.msra.mxu0 %v5146_v57  ;;  %v4683_v40 = vpop.f32.mrb[20].mxu1 }
 0x27e   :  { %4765 = vmatprep.subr.bf16.mxu0 %v5147_v50  ;;  %v1237_v35 = vpop.f32.mrb[21].mxu1 }
 0x27f   :  { %v4684_v43 = vpop.f32.mrb[22].mxu1 }
 0x280   :  { %v1423_v36 = vpack.c.bf16 %v4684_v43, %v4683_v40  ;;  %v1240_v33 = vpop.f32.mrb[23].mxu1 }
 0x281   :  { %v1422_v49 = vpack.c.bf16 %v1240_v33, %v1237_v35  ;;  %v5151_v35 = vld [vmem:[%s6501_s4 + $0x70] sm:$0xff]  }
 0x284   :  { %4762 = vmatmul.mubr.msk.bf16.vlgmr.msra.gmra.mrb[32].mxu0 %vm1464_vm0, %v1421_v60 }
 0x285   :  { %4766 = vmatpush3.bf16.msra.mxu0 %v5147_v50  ;;  %4769 = vmatprep.mubr.msk.bf16.mxu0 %vm1464_vm0, %v1422_v49  ;;  %v4687_v41 = vpop.f32.mrb[24].mxu1 }
 0x286   :  { %4767 = vmatprep.subr.bf16.mxu0 %v5148_v42  ;;  %v1253_v48 = vpop.f32.mrb[25].mxu1 }
 0x287   :  { %v4688_v32 = vpop.f32.mrb[26].mxu1 }
 0x288   :  { %v1425_v44 = vpack.c.bf16 %v4688_v32, %v4687_v41  ;;  %v1256_v51 = vpop.f32.mrb[27].mxu1  ;;  %v5153_v32 = vld [vmem:[%s6501_s4 + $0x80] sm:$0xff]  }
 0x289   :  { %4768 = vmatpush3.bf16.msra.mxu0 %v5148_v42  ;;  %v1424_v56 = vpack.c.bf16 %v1256_v51, %v1253_v48 }
 0x28a   :  { %4773 = vmatprep.subr.bf16.mxu0 %v5149_v58 }
 0x28d   :  { %v4691_v57 = vpop.f32.mrb[28].mxu1 }
 0x28e   :  { %v1269_v60 = vpop.f32.mrb[29].mxu1 }
 0x28f   :  { %v4692_v52 = vpop.f32.mrb[30].mxu1 }
 0x290   :  { %4770 = vmatmul.mubr.msk.bf16.vlgmr.msra.gmra.mrb[32].mxu0 %vm1464_vm0, %v1423_v36  ;;  %v1427_v34 = vpack.c.bf16 %v4692_v52, %v4691_v57  ;;  %v1272_v50 = vpop.f32.mrb[31].mxu1  ;;  %v5152_v36 = vld [vmem:[%s6501_s4 + $0x78] sm:$0xff]  }
 0x291   :  { %4774 = vmatpush3.bf16.msra.mxu0 %v5149_v58  ;;  %4777 = vmatprep.mubr.msk.bf16.mxu0 %vm1464_vm0, %v1424_v56  ;;  %v1426_v40 = vpack.c.bf16 %v1272_v50, %v1269_v60 }
 0x292   :  { %4775 = vmatprep.subr.bf16.mxu0 %v5150_v59 }
 0x295   :  { %4776 = vmatpush3.bf16.msra.mxu0 %v5150_v59  ;;  %v4695_v43 = vpop.f32.mrb[32].mxu1 }
 0x296   :  { %4781 = vmatprep.subr.bf16.mxu0 %v5151_v35  ;;  %v1285_v33 = vpop.f32.mrb[33].mxu1 }
 0x297   :  { %v4696_v49 = vpop.f32.mrb[34].mxu1 }
 0x298   :  { %v1429_v42 = vpack.c.bf16 %v4696_v49, %v4695_v43  ;;  %v1288_v41 = vpop.f32.mrb[35].mxu1  ;;  %v5155_v49 = vld [vmem:[%s6501_s4 + $0x90] sm:$0xff]  }
 0x299   :  { %v1428_v48 = vpack.c.bf16 %v1288_v41, %v1285_v33 }
 0x29c   :  { %4778 = vmatmul.mubr.msk.bf16.vlgmr.msra.gmra.mrb[32].mxu0 %vm1464_vm0, %v1425_v44  ;;  %v5154_v44 = vld [vmem:[%s6501_s4 + $0x88] sm:$0xff]  }
 0x29d   :  { %4782 = vmatpush3.bf16.msra.mxu0 %v5151_v35  ;;  %4785 = vmatprep.mubr.msk.bf16.mxu0 %vm1464_vm0, %v1426_v40  ;;  %v4699_v58 = vpop.f32.mrb[36].mxu1 }
 0x29e   :  { %4783 = vmatprep.subr.bf16.mxu0 %v5152_v36  ;;  %v1301_v51 = vpop.f32.mrb[37].mxu1 }
 0x29f   :  { %v4700_v56 = vpop.f32.mrb[38].mxu1 }
 0x2a0   :  { %v1431_v57 = vpack.c.bf16 %v4700_v56, %v4699_v58  ;;  %v1304_v59 = vpop.f32.mrb[39].mxu1 }
 0x2a1   :  { %4784 = vmatpush3.bf16.msra.mxu0 %v5152_v36  ;;  %v1430_v60 = vpack.c.bf16 %v1304_v59, %v1301_v51 }
 0x2a2   :  { %4789 = vmatprep.subr.bf16.mxu0 %v5153_v32 }
 0x2a5   :  { %v4703_v52 = vpop.f32.mrb[40].mxu1 }
 0x2a6   :  { %v1317_v50 = vpop.f32.mrb[41].mxu1 }
 0x2a7   :  { %v4704_v40 = vpop.f32.mrb[42].mxu1 }
 0x2a8   :  { %4786 = vmatmul.mubr.msk.bf16.vlgmr.msra.gmra.mrb[32].mxu0 %vm1464_vm0, %v1427_v34  ;;  %v1433_v35 = vpack.c.bf16 %v4704_v40, %v4703_v52  ;;  %v1320_v43 = vpop.f32.mrb[43].mxu1  ;;  %v5156_v34 = vld [vmem:[%s6501_s4 + $0x98] sm:$0xff]  }
 0x2a9   :  { %4790 = vmatpush3.bf16.msra.mxu0 %v5153_v32  ;;  %4793 = vmatprep.mubr.msk.bf16.mxu0 %vm1464_vm0, %v1428_v48  ;;  %v1432_v33 = vpack.c.bf16 %v1320_v43, %v1317_v50  ;;  %v5157_v32 = vld [vmem:[%s6501_s4 + $0xa0] sm:$0xff]  }
 0x2aa   :  { %4791 = vmatprep.subr.bf16.mxu0 %v5154_v44 }
 0x2ad   :  { %4792 = vmatpush3.bf16.msra.mxu0 %v5154_v44  ;;  %v4707_v41 = vpop.f32.mrb[44].mxu1 }
 0x2ae   :  { %4797 = vmatprep.subr.bf16.mxu0 %v5155_v49  ;;  %v1333_v36 = vpop.f32.mrb[45].mxu1 }
 0x2af   :  { %v4708_v58 = vpop.f32.mrb[46].mxu1 }
 0x2b0   :  { %v1435_v51 = vpack.c.bf16 %v4708_v58, %v4707_v41  ;;  %v1336_v56 = vpop.f32.mrb[47].mxu1 }
 0x2b1   :  { %v1434_v59 = vpack.c.bf16 %v1336_v56, %v1333_v36 }
 0x2b4   :  { %4794 = vmatmul.mubr.msk.bf16.vlgmr.msra.gmra.mrb[32].mxu0 %vm1464_vm0, %v1429_v42  ;;  %v5158_v42 = vld [vmem:[%s6501_s4 + $0xa8] sm:$0xff]  }
 0x2b5   :  { %4798 = vmatpush3.bf16.msra.mxu0 %v5155_v49  ;;  %4801 = vmatprep.mubr.msk.bf16.mxu0 %vm1464_vm0, %v1430_v60  ;;  %v4711_v48 = vpop.f32.mrb[48].mxu1 }
 0x2b6   :  { %4799 = vmatprep.subr.bf16.mxu0 %v5156_v34  ;;  %v1349_v52 = vpop.f32.mrb[49].mxu1 }
 0x2b7   :  { %v4712_v44 = vpop.f32.mrb[50].mxu1 }
 0x2b8   :  { %v1437_v50 = vpack.c.bf16 %v4712_v44, %v4711_v48  ;;  %v1352_v40 = vpop.f32.mrb[51].mxu1 }
 0x2b9   :  { %4800 = vmatpush3.bf16.msra.mxu0 %v5156_v34  ;;  %v1436_v43 = vpack.c.bf16 %v1352_v40, %v1349_v52  ;;  %v5159_v34 = vld [vmem:[%s6501_s4 + $0xb0] sm:$0xff]  }
 0x2ba   :  { %4805 = vmatprep.subr.bf16.mxu0 %v5157_v32 }
 0x2bd   :  { %v4715_v41 = vpop.f32.mrb[52].mxu1 }
 0x2be   :  { %v1365_v49 = vpop.f32.mrb[53].mxu1 }
 0x2bf   :  { %v4716_v60 = vpop.f32.mrb[54].mxu1 }
 0x2c0   :  { %4802 = vmatmul.mubr.msk.bf16.vlgmr.msra.gmra.mrb[32].mxu0 %vm1464_vm0, %v1431_v57  ;;  %v1439_v36 = vpack.c.bf16 %v4716_v60, %v4715_v41  ;;  %v1368_v58 = vpop.f32.mrb[55].mxu1  ;;  %v5160_v57 = vld [vmem:[%s6501_s4 + $0xb8] sm:$0xff]  }
 0x2c1   :  { %4806 = vmatpush3.bf16.msra.mxu0 %v5157_v32  ;;  %4809 = vmatprep.mubr.msk.bf16.mxu0 %vm1464_vm0, %v1432_v33  ;;  %v1438_v56 = vpack.c.bf16 %v1368_v58, %v1365_v49  ;;  %v5161_v32 = vld [vmem:[%s6501_s4 + $0xc0] sm:$0xff]   ;;  %v5164_v58 = vld [vmem:[%s6501_s4 + $0xd8] sm:$0xff]  }
 0x2c2   :  { %4807 = vmatprep.subr.bf16.mxu0 %v5158_v42 }
 0x2c5   :  { %4808 = vmatpush3.bf16.msra.mxu0 %v5158_v42  ;;  %v4719_v48 = vpop.f32.mrb[56].mxu1 }
 0x2c6   :  { %4813 = vmatprep.subr.bf16.mxu0 %v5159_v34  ;;  %v1381_v52 = vpop.f32.mrb[57].mxu1 }
 0x2c7   :  { %v4720_v44 = vpop.f32.mrb[58].mxu1 }
 0x2c8   :  { %v1441_v40 = vpack.c.bf16 %v4720_v44, %v4719_v48  ;;  %v1384_v47 = vpop.f32.mrb[59].mxu1  ;;  %v5181_v44 = vld [vmem:[%s6504_s7 + $0x20] sm:$0xff]  }
 0x2c9   :  { %v1440_v31 = vpack.c.bf16 %v1384_v47, %v1381_v52  ;;  %v6511_v52 = vmov 0.0  }
 0x2ca   :  { %4853 = vmatprep.subr.bf16.mxu1 %v6511_v52  ;;  %4857 = vmatprep.mubr.msk.bf16.mxu1 %vm5243_vm1, %v6511_v52 }
 0x2cc   :  { %4810 = vmatmul.mubr.msk.bf16.vlgmr.msra.gmra.mrb[32].mxu0 %vm1464_vm0, %v1433_v35  ;;  %v5162_v35 = vld [vmem:[%s6501_s4 + $0xc8] sm:$0xff]  }
 0x2cd   :  { %4814 = vmatpush3.bf16.msra.mxu0 %v5159_v34  ;;  %4817 = vmatprep.mubr.msk.bf16.mxu0 %vm1464_vm0, %v1434_v59  ;;  %v4723_v33 = vpop.f32.mrb[60].mxu1  ;;  %v5163_v59 = vld [vmem:[%s6501_s4 + $0xd0] sm:$0xff]  }
 0x2ce   :  { %4815 = vmatprep.subr.bf16.mxu0 %v5160_v57  ;;  %v1397_v41 = vpop.f32.mrb[61].mxu1 }
 0x2cf   :  { %v4724_v42 = vpop.f32.mrb[62].mxu1 }
 0x2d0   :  { %v1443_v49 = vpack.c.bf16 %v4724_v42, %v4723_v33  ;;  %v1400_v60 = vpop.f32.mrb[63].mxu1 }
 0x2d1   :  { %4816 = vmatpush3.bf16.msra.mxu0 %v5160_v57  ;;  %v1442_v47 = vpack.c.bf16 %v1400_v60, %v1397_v41  ;;  %v4261_v57 = vld [vmem:[%s6502_s5] ss:$0 sm:$0xff] }
 0x2d2   :  { %4821 = vmatprep.subr.bf16.mxu0 %v5161_v32 }
 0x2d8   :  { %4818 = vmatmul.mubr.msk.bf16.vlgmr.msra.gmra.mrb[32].mxu0 %vm1464_vm0, %v1435_v51  ;;  %v5165_v51 = vld [vmem:[%s6501_s4 + $0xe0] sm:$0xff]  }
 0x2d9   :  { %4822 = vmatpush3.bf16.msra.mxu0 %v5161_v32  ;;  %4825 = vmatprep.mubr.msk.bf16.mxu0 %vm1464_vm0, %v1436_v43  ;;  %v5166_v43 = vld [vmem:[%s6501_s4 + $0xe8] sm:$0xff]  }
 0x2da   :  { %4823 = vmatprep.subr.bf16.mxu0 %v5162_v35 }
 0x2dd   :  { %4824 = vmatpush3.bf16.msra.mxu0 %v5162_v35 }
 0x2de   :  { %4829 = vmatprep.subr.bf16.mxu0 %v5163_v59 }
 0x2e4   :  { %4826 = vmatmul.mubr.msk.bf16.vlgmr.msra.gmra.mrb[32].mxu0 %vm1464_vm0, %v1437_v50  ;;  %v5167_v50 = vld [vmem:[%s6501_s4 + $0xf0] sm:$0xff]  }
 0x2e5   :  { %4830 = vmatpush3.bf16.msra.mxu0 %v5163_v59  ;;  %4833 = vmatprep.mubr.msk.bf16.mxu0 %vm1464_vm0, %v1438_v56  ;;  %v5168_v56 = vld [vmem:[%s6501_s4 + $0xf8] sm:$0xff]  }
 0x2e6   :  { %4831 = vmatprep.subr.bf16.mxu0 %v5164_v58 }
 0x2e9   :  { %4832 = vmatpush3.bf16.msra.mxu0 %v5164_v58 }
 0x2ea   :  { %4837 = vmatprep.subr.bf16.mxu0 %v5165_v51 }
 0x2f0   :  { %4834 = vmatmul.mubr.msk.bf16.vlgmr.msra.gmra.mrb[32].mxu0 %vm1464_vm0, %v1439_v36 }
 0x2f1   :  { %4838 = vmatpush3.bf16.msra.mxu0 %v5165_v51  ;;  %4841 = vmatprep.mubr.msk.bf16.mxu0 %vm1464_vm0, %v1440_v31 }
 0x2f2   :  { %4839 = vmatprep.subr.bf16.mxu0 %v5166_v43 }
 0x2f5   :  { %4840 = vmatpush3.bf16.msra.mxu0 %v5166_v43 }
 0x2f6   :  { %4845 = vmatprep.subr.bf16.mxu0 %v5167_v50 }
 0x2fc   :  { %4842 = vmatmul.mubr.msk.bf16.vlgmr.msra.gmra.mrb[32].mxu0 %vm1464_vm0, %v1441_v40 }
 0x2fd   :  { %4846 = vmatpush3.bf16.msra.mxu0 %v5167_v50  ;;  %4849 = vmatprep.mubr.msk.bf16.mxu0 %vm1464_vm0, %v1442_v47 }
 0x2fe   :  { %4847 = vmatprep.subr.bf16.mxu0 %v5168_v56 }
 0x301   :  { %4848 = vmatpush3.bf16.msra.mxu0 %v5168_v56 }
 0x302   :  { %4893 = vmatprep.subr.bf16.mxu0 %v6511_v52 }
 0x308   :  { %4850 = vmatmul.mubr.msk.bf16.vlgmr.msra.gmra.mrb[32].mxu0 %vm1464_vm0, %v1443_v49 }
 0x309   :  { %4901 = vmatprep.mubr.msk.bf16.mxu0 %vm5243_vm1, %v6511_v52  ;;  %4894 = vmatpush3.bf16.msra.mxu0 %v5181_v44 }
 0x30a   :  { %4895 = vmatprep.subr.bf16.mxu0 %v6511_v52 }
 0x337   :  { %v4731_v31 = vpop.f32.mrb[64].mxu1 }
 0x338   :  { %v1505_v36 = vpop.f32.mrb[65].mxu1 }
 0x339   :  { %v4732_v34 = vpop.f32.mrb[66].mxu1 }
 0x33a   :  { %v1508_v48 = vpop.f32.mrb[67].mxu1 }
 0x3db   :  { %v4851_v40 = vpop.f32.mrb[32].mxu0 }
 0x3dc   :  { %v5001_v33 = vadd.f32 %v4851_v40, %v4731_v31  ;;  %v2618_v32 = vpop.f32.mrb[33].mxu0  ;;  %v5169_v31 = vld [vmem:[%s6503_s6] sm:$0xff]   ;;  %v5172_v40 = vld [vmem:[%s6503_s6 + $0x18] sm:$0xff]  }
 0x3dd   :  { %v5002_v41 = vadd.f32 %v2618_v32, %v1505_v36  ;;  %v4852_v42 = vpop.f32.mrb[34].mxu0  ;;  %v5178_v36 = vld [vmem:[%s6504_s7] sm:$0xff]   ;;  %v5175_v32 = vld [vmem:[%s6503_s6 + $0x30] sm:$0xff]  }
 0x3de   :  { %v2646_v49 = vadd.f32 %v5001_v33, %v4261_v57  ;;  %v5003_v60 = vadd.f32 %v4852_v42, %v4732_v34  ;;  %v2621_v47 = vpop.f32.mrb[35].mxu0  ;;  %v5170_v34 = vld [vmem:[%s6503_s6 + $0x8] sm:$0xff]   ;;  %v5177_v42 = vld [vmem:[%s6503_s6 + $0x40] sm:$0xff]  }
 0x3df   :  { %v2644_v35 = vadd.f32 %v5002_v41, %v4261_v57  ;;  %v5004_v59 = vadd.f32 %v2621_v47, %v1508_v48  ;;  %v5180_v48 = vld [vmem:[%s6504_s7 + $0x10] sm:$0xff]   ;;  %v5174_v33 = vld [vmem:[%s6503_s6 + $0x28] sm:$0xff]   ;;  %v5176_v41 = vld [vmem:[%s6503_s6 + $0x38] sm:$0xff]  }
 0x3e0   :  { %v2647_v58 = vadd.f32 %v5003_v60, %v4261_v57  ;;  %v2650_v43 = vmax.f32 %v2646_v49, 0.0  ;;  %v5182_v49 = vld [vmem:[%s6504_s7 + $0x28] sm:$0xff]   ;;  %v5183_v60 = vld [vmem:[%s6504_s7 + $0x18] sm:$0xff]   ;;  %v5184_v47 = vld [vmem:[%s6504_s7 + $0x30] sm:$0xff]  }
 0x3e1   :  { %v2645_v51 = vadd.f32 %v5004_v59, %v4261_v57  ;;  %v2648_v56 = vmax.f32 %v2644_v35, 0.0  ;;  %v5173_v57 = vld [vmem:[%s6503_s6 + $0x20] sm:$0xff]   ;;  %4896 = vmatpush3.bf16.msra.mxu0 %v5182_v49  ;;  %v5185_v35 = vld [vmem:[%s6504_s7 + $0x38] sm:$0xff]  }
 0x3e2   :  { %v2651_v50 = vmax.f32 %v2647_v58, 0.0  ;;  %4897 = vmatprep.subr.bf16.mxu0 %v6543_v39 }
 0x3e3   :  { %v2649_v44 = vmax.f32 %v2645_v51, 0.0 }
 0x3e4   :  { %v2653_v52 = vpack.c.bf16 %v2651_v50, %v2650_v43  ;;  %v5187_v43 = vld [vmem:[%s6504_s7 + $0x60] sm:$0xff]  }
 0x3e5   :  { %v2652_v55 = vpack.c.bf16 %v2649_v44, %v2648_v56  ;;  %4898 = vmatpush3.bf16.msra.mxu0 %v5184_v47  ;;  %v5189_v44 = vld [vmem:[%s6504_s7 + $0x68] sm:$0xff]  }
 0x3e6   :  { %4899 = vmatprep.subr.bf16.mxu0 %v6543_v39 }
 0x3e7   :  { %4854 = vmatpush3.bf16.msra.mxu1 %v2652_v55  ;;  %v5179_v55 = vld [vmem:[%s6504_s7 + $0x8] sm:$0xff]  }
 0x3e8   :  { %4855 = vmatprep.subr.bf16.mxu1 %v6543_v39 }
 0x3e9   :  { %4900 = vmatpush3.bf16.msra.mxu0 %v5185_v35  ;;  %v5192_v35 = vld [vmem:[%s6504_s7 + $0x58] sm:$0xff]  }
 0x3ea   :  { %4917 = vmatprep.subr.bf16.mxu0 %v6543_v39 }
 0x3eb   :  { %4856 = vmatpush3.bf16.msra.mxu1 %v2653_v52  ;;  %v5171_v52 = vld [vmem:[%s6503_s6 + $0x10] sm:$0xff]  }
 0x3ec   :  { %4905 = vmatprep.subr.bf16.mxu1 %v6543_v39 }
 0x3ee   :  { %4858 = vmatmul.mubr.msk.bf16.vlgmr.msra.gmra.mrb[68].mxu1 %vm1464_vm0, %v5169_v31 }
 0x3ef   :  { %4861 = vmatprep.mubr.msk.bf16.mxu1 %vm5243_vm1, %v6543_v39  ;;  %4906 = vmatpush3.bf16.msra.mxu1 %v5178_v36 }
 0x3f0   :  { %4907 = vmatprep.subr.bf16.mxu1 %v6543_v39 }
 0x3f3   :  { %4908 = vmatpush3.bf16.msra.mxu1 %v5179_v55 }
 0x3f4   :  { %4909 = vmatprep.subr.bf16.mxu1 %v6543_v39 }
 0x3f6   :  { %4862 = vmatmul.mubr.msk.bf16.gmra.mrb[72].mxu1 %vm1464_vm0, %v5170_v34  ;;  %v5186_v34 = vld [vmem:[%s6504_s7 + $0x40] sm:$0xff]  }
 0x3f7   :  { %4865 = vmatprep.mubr.msk.bf16.mxu1 %vm5243_vm1, %v6543_v39  ;;  %4910 = vmatpush3.bf16.msra.mxu1 %v5180_v48  ;;  %v5191_v48 = vld [vmem:[%s6504_s7 + $0x70] sm:$0xff]  }
 0x3f8   :  { %4911 = vmatprep.subr.bf16.mxu1 %v6543_v39 }
 0x3fb   :  { %4912 = vmatpush3.bf16.msra.mxu1 %v5183_v60 }
 0x3fc   :  { %4929 = vmatprep.subr.bf16.mxu1 %v6543_v39 }
 0x3fe   :  { %4866 = vmatmul.mubr.msk.bf16.gmra.mrb[76].mxu1 %vm1464_vm0, %v5171_v52 }
 0x3ff   :  { %4869 = vmatprep.mubr.msk.bf16.mxu1 %vm5243_vm1, %v6543_v39 }
 0x406   :  { %4870 = vmatmul.mubr.msk.bf16.gmra.mrb[80].mxu1 %vm1464_vm0, %v5172_v40 }
 0x407   :  { %4873 = vmatprep.mubr.msk.bf16.mxu1 %vm5243_vm1, %v6543_v39 }
 0x40e   :  { %4874 = vmatmul.mubr.msk.bf16.gmra.mrb[84].mxu1 %vm1464_vm0, %v5173_v57  ;;  %v5188_v57 = vld [vmem:[%s6504_s7 + $0x48] sm:$0xff]  }
 0x40f   :  { %4877 = vmatprep.mubr.msk.bf16.mxu1 %vm5243_vm1, %v6543_v39 }
 0x416   :  { %4878 = vmatmul.mubr.msk.bf16.gmra.mrb[88].mxu1 %vm1464_vm0, %v5174_v33  ;;  %v5193_v33 = vld [vmem:[%s6504_s7 + $0x78] sm:$0xff]  }
 0x417   :  { %4881 = vmatprep.mubr.msk.bf16.mxu1 %vm5243_vm1, %v6543_v39 }
 0x41e   :  { %4882 = vmatmul.mubr.msk.bf16.gmra.mrb[92].mxu1 %vm1464_vm0, %v5175_v32 }
 0x41f   :  { %4885 = vmatprep.mubr.msk.bf16.mxu1 %vm5243_vm1, %v6543_v39 }
 0x426   :  { %4886 = vmatmul.mubr.msk.bf16.gmra.mrb[96].mxu1 %vm1464_vm0, %v5176_v41 }
 0x427   :  { %4889 = vmatprep.mubr.msk.bf16.mxu1 %vm5243_vm1, %v6543_v39 }
 0x42e   :  { %4890 = vmatmul.mubr.msk.bf16.gmra.mrb[100].mxu1 %vm1464_vm0, %v5177_v42  ;;  %v5190_v42 = vld [vmem:[%s6504_s7 + $0x50] sm:$0xff]  }
 0x42f   :  { %4913 = vmatprep.mubr.msk.bf16.mxu1 %vm5243_vm1, %v6543_v39 }
 0x4c1   :  { %v2778_v59 = vpop.f32.mrb[68].mxu1 }
 0x4c2   :  { %v4859_v58 = vpop.f32.mrb[69].mxu1 }
 0x4c3   :  { %v2781_v51 = vpop.f32.mrb[70].mxu1 }
 0x4c4   :  { %v2849_v50 = vpack.c.bf16 %v2781_v51, %v2778_v59  ;;  %v4860_v56 = vpop.f32.mrb[71].mxu1 }
 0x4c6   :  { %4914 = vmatmul.mubr.msk.bf16.vlgmr.msra.gmra.mrb[104].mxu1 %vm2898_vm2, %v2849_v50  ;;  %v5195_v50 = vld [vmem:[%s6504_s7 + $0xa0] sm:$0xff]  }
 0x4c7   :  { %4930 = vmatpush3.bf16.msra.mxu1 %v5187_v43  ;;  %4937 = vmatprep.mubr.msk.bf16.mxu1 %vm5243_vm1, %v6543_v39  ;;  %v5194_v43 = vld [vmem:[%s6504_s7 + $0x80] sm:$0xff]  }
 0x4c8   :  { %4931 = vmatprep.subr.bf16.mxu1 %v6543_v39 }
 0x4c9   :  { %v2786_v31 = vpop.f32.mrb[72].mxu1 }
 0x4ca   :  { %v4863_v36 = vpop.f32.mrb[73].mxu1 }
 0x4cb   :  { %v2789_v55 = vpop.f32.mrb[74].mxu1  ;;  %4932 = vmatpush3.bf16.msra.mxu1 %v5189_v44  ;;  %v5197_v36 = vld [vmem:[%s6504_s7 + $0xa8] sm:$0xff]  }
 0x4cc   :  { %v2850_v52 = vpack.c.bf16 %v2789_v55, %v2786_v31  ;;  %v4864_v40 = vpop.f32.mrb[75].mxu1  ;;  %4933 = vmatprep.subr.bf16.mxu1 %v6543_v39  ;;  %v5196_v31 = vld [vmem:[%s6504_s7 + $0x88] sm:$0xff]  }
 0x4cd   :  { %v5199_v40 = vld [vmem:[%s6504_s7 + $0xb0] sm:$0xff]  }
 0x4ce   :  { %4902 = vmatmul.mubr.msk.bf16.vlgmr.msra.gmra.mrb[36].mxu0 %vm2898_vm2, %v2850_v52 }
 0x4cf   :  { %4918 = vmatpush3.bf16.msra.mxu0 %v5186_v34  ;;  %4934 = vmatpush3.bf16.msra.mxu1 %v5191_v48  ;;  %v5198_v48 = vld [vmem:[%s6504_s7 + $0x90] sm:$0xff]  }
 0x4d0   :  { %4919 = vmatprep.subr.bf16.mxu0 %v6543_v39  ;;  %4935 = vmatprep.subr.bf16.mxu1 %v6543_v39 }
 0x4d1   :  { %v2794_v32 = vpop.f32.mrb[76].mxu1  ;;  %4925 = vmatprep.mubr.msk.bf16.mxu0 %vm5243_vm1, %v6543_v39 }
 0x4d2   :  { %v4867_v41 = vpop.f32.mrb[77].mxu1 }
 0x4d3   :  { %4920 = vmatpush3.bf16.msra.mxu0 %v5188_v57  ;;  %v2797_v49 = vpop.f32.mrb[78].mxu1  ;;  %4936 = vmatpush3.bf16.msra.mxu1 %v5193_v33  ;;  %v5201_v41 = vld [vmem:[%s6504_s7 + $0xb8] sm:$0xff]  }
 0x4d4   :  { %4921 = vmatprep.subr.bf16.mxu0 %v6543_v39  ;;  %v2851_v60 = vpack.c.bf16 %v2797_v49, %v2794_v32  ;;  %v4868_v47 = vpop.f32.mrb[79].mxu1  ;;  %4953 = vmatprep.subr.bf16.mxu1 %v6543_v39  ;;  %v5200_v32 = vld [vmem:[%s6504_s7 + $0x98] sm:$0xff]  }
 0x4d5   :  { %v5202_v47 = vld [vmem:[%s6504_s7 + $0xc0] sm:$0xff]  }
 0x4d7   :  { %4922 = vmatpush3.bf16.msra.mxu0 %v5190_v42 }
 0x4d8   :  { %4923 = vmatprep.subr.bf16.mxu0 %v6543_v39 }
 0x4d9   :  { %v2802_v59 = vpop.f32.mrb[80].mxu1 }
 0x4da   :  { %v4871_v58 = vpop.f32.mrb[81].mxu1 }
 0x4db   :  { %4924 = vmatpush3.bf16.msra.mxu0 %v5192_v35  ;;  %v2805_v51 = vpop.f32.mrb[82].mxu1  ;;  %v5203_v35 = vld [vmem:[%s6504_s7 + $0xe0] sm:$0xff]  }
 0x4dc   :  { %v2852_v56 = vpack.c.bf16 %v2805_v51, %v2802_v59  ;;  %4941 = vmatprep.subr.bf16.mxu0 %v6543_v39  ;;  %v4872_v44 = vpop.f32.mrb[83].mxu1  ;;  %v5204_v51 = vld [vmem:[%s6504_s7 + $0xc8] sm:$0xff]  }
 0x4dd   :  { %v5206_v44 = vld [vmem:[%s6504_s7 + $0xd0] sm:$0xff]  }
 0x4de   :  { %4926 = vmatmul.mubr.msk.bf16.vlgmr.msra.gmra.mrb[40].mxu0 %vm2898_vm2, %v2851_v60  ;;  %4938 = vmatmul.mubr.msk.bf16.vlgmr.msra.gmra.mrb[108].mxu1 %vm2898_vm2, %v2852_v56 }
 0x4df   :  { %4942 = vmatpush3.bf16.msra.mxu0 %v5194_v43  ;;  %4954 = vmatpush3.bf16.msra.mxu1 %v5195_v50  ;;  %v5205_v43 = vld [vmem:[%s6504_s7 + $0xe8] sm:$0xff]  }
 0x4e0   :  { %4943 = vmatprep.subr.bf16.mxu0 %v6543_v39  ;;  %4955 = vmatprep.subr.bf16.mxu1 %v6543_v39 }
 0x4e1   :  { %v2810_v55 = vpop.f32.mrb[84].mxu1  ;;  %4949 = vmatprep.mubr.msk.bf16.mxu0 %vm5243_vm1, %v6543_v39  ;;  %4961 = vmatprep.mubr.msk.bf16.mxu1 %vm5243_vm1, %v6543_v39 }
 0x4e2   :  { %v4875_v34 = vpop.f32.mrb[85].mxu1 }
 0x4e3   :  { %4944 = vmatpush3.bf16.msra.mxu0 %v5196_v31  ;;  %4956 = vmatpush3.bf16.msra.mxu1 %v5197_v36  ;;  %v2813_v52 = vpop.f32.mrb[86].mxu1  ;;  %v5207_v36 = vld [vmem:[%s6504_s7 + $0xf0] sm:$0xff]  }
 0x4e4   :  { %4945 = vmatprep.subr.bf16.mxu0 %v6543_v39  ;;  %4957 = vmatprep.subr.bf16.mxu1 %v6543_v39  ;;  %v2853_v57 = vpack.c.bf16 %v2813_v52, %v2810_v55  ;;  %v4876_v33 = vpop.f32.mrb[87].mxu1  ;;  %v5209_v52 = vld [vmem:[%s6504_s7 + $0xf8] sm:$0xff]  }
 0x4e7   :  { %4946 = vmatpush3.bf16.msra.mxu0 %v5198_v48  ;;  %4958 = vmatpush3.bf16.msra.mxu1 %v5199_v40  ;;  %v5208_v48 = vld [vmem:[%s6504_s7 + $0xd8] sm:$0xff]  }
 0x4e8   :  { %4947 = vmatprep.subr.bf16.mxu0 %v6543_v39  ;;  %4959 = vmatprep.subr.bf16.mxu1 %v6543_v39 }
 0x4e9   :  { %v2818_v42 = vpop.f32.mrb[88].mxu1 }
 0x4ea   :  { %v4879_v49 = vpop.f32.mrb[89].mxu1 }
 0x4eb   :  { %4948 = vmatpush3.bf16.msra.mxu0 %v5200_v32  ;;  %v2821_v60 = vpop.f32.mrb[90].mxu1  ;;  %4960 = vmatpush3.bf16.msra.mxu1 %v5201_v41  ;;  %v5210_v32 = vld [vmem:[%s6504_s7 + $0x100] sm:$0xff]   ;;  %v5211_v49 = vld [vmem:[%s6504_s7 + $0x108] sm:$0xff]  }
 0x4ec   :  { %v2854_v59 = vpack.c.bf16 %v2821_v60, %v2818_v42  ;;  %4965 = vmatprep.subr.bf16.mxu0 %v6543_v39  ;;  %4977 = vmatprep.subr.bf16.mxu1 %v6543_v39  ;;  %v4880_v58 = vpop.f32.mrb[91].mxu1 }
 0x4ee   :  { %4950 = vmatmul.mubr.msk.bf16.vlgmr.msra.gmra.mrb[44].mxu0 %vm2898_vm2, %v2853_v57  ;;  %4962 = vmatmul.mubr.msk.bf16.vlgmr.msra.gmra.mrb[112].mxu1 %vm2898_vm2, %v2854_v59 }
 0x4ef   :  { %4966 = vmatpush3.bf16.msra.mxu0 %v5202_v47  ;;  %4978 = vmatpush3.bf16.msra.mxu1 %v5203_v35  ;;  %v5212_v35 = vld [vmem:[%s6504_s7 + $0x110] sm:$0xff]  }
 0x4f0   :  { %4967 = vmatprep.subr.bf16.mxu0 %v6543_v39  ;;  %4979 = vmatprep.subr.bf16.mxu1 %v6543_v39 }
 0x4f1   :  { %v2826_v50 = vpop.f32.mrb[92].mxu1  ;;  %4973 = vmatprep.mubr.msk.bf16.mxu0 %vm5243_vm1, %v6543_v39  ;;  %4985 = vmatprep.mubr.msk.bf16.mxu1 %vm5243_vm1, %v6543_v39 }
 0x4f2   :  { %v4883_v56 = vpop.f32.mrb[93].mxu1 }
 0x4f3   :  { %4968 = vmatpush3.bf16.msra.mxu0 %v5204_v51  ;;  %4980 = vmatpush3.bf16.msra.mxu1 %v5205_v43  ;;  %v2829_v31 = vpop.f32.mrb[94].mxu1  ;;  %v5213_v43 = vld [vmem:[%s6504_s7 + $0x118] sm:$0xff]  }
 0x4f4   :  { %4969 = vmatprep.subr.bf16.mxu0 %v6543_v39  ;;  %4981 = vmatprep.subr.bf16.mxu1 %v6543_v39  ;;  %v2855_v55 = vpack.c.bf16 %v2829_v31, %v2826_v50  ;;  %v4884_v34 = vpop.f32.mrb[95].mxu1 }
 0x4f7   :  { %4970 = vmatpush3.bf16.msra.mxu0 %v5206_v44  ;;  %4982 = vmatpush3.bf16.msra.mxu1 %v5207_v36 }
 0x4f8   :  { %4971 = vmatprep.subr.bf16.mxu0 %v6543_v39  ;;  %4983 = vmatprep.subr.bf16.mxu1 %v6543_v39 }
 0x4f9   :  { %v2834_v40 = vpop.f32.mrb[96].mxu1 }
 0x4fa   :  { %v4887_v57 = vpop.f32.mrb[97].mxu1 }
 0x4fb   :  { %4972 = vmatpush3.bf16.msra.mxu0 %v5208_v48  ;;  %v2837_v33 = vpop.f32.mrb[98].mxu1  ;;  %4984 = vmatpush3.bf16.msra.mxu1 %v5209_v52 }
 0x4fc   :  { %v2856_v41 = vpack.c.bf16 %v2837_v33, %v2834_v40  ;;  %4989 = vmatprep.subr.bf16.mxu0 %v6543_v39  ;;  %v4888_v42 = vpop.f32.mrb[99].mxu1 }
 0x4fe   :  { %4974 = vmatmul.mubr.msk.bf16.vlgmr.msra.gmra.mrb[48].mxu0 %vm2898_vm2, %v2855_v55  ;;  %4986 = vmatmul.mubr.msk.bf16.vlgmr.msra.gmra.mrb[116].mxu1 %vm2898_vm2, %v2856_v41 }
 0x4ff   :  { %4990 = vmatpush3.bf16.msra.mxu0 %v5210_v32  ;;  %4997 = vmatprep.mubr.msk.bf16.mxu0 %vm5243_vm1, %v6543_v39 }
 0x500   :  { %4991 = vmatprep.subr.bf16.mxu0 %v6543_v39 }
 0x501   :  { %v2842_v60 = vpop.f32.mrb[100].mxu1 }
 0x502   :  { %v4891_v47 = vpop.f32.mrb[101].mxu1 }
 0x503   :  { %4992 = vmatpush3.bf16.msra.mxu0 %v5211_v49  ;;  %v2845_v59 = vpop.f32.mrb[102].mxu1 }
 0x504   :  { %4993 = vmatprep.subr.bf16.mxu0 %v6543_v39  ;;  %v2857_v58 = vpack.c.bf16 %v2845_v59, %v2842_v60  ;;  %v4892_v51 = vpop.f32.mrb[103].mxu1 }
 0x507   :  { %4994 = vmatpush3.bf16.msra.mxu0 %v5212_v35 }
 0x508   :  { %4995 = vmatprep.subr.bf16.mxu0 %v6543_v39 }
 0x50b   :  { %4996 = vmatpush3.bf16.msra.mxu0 %v5213_v43 }
 0x50e   :  { %4998 = vmatmul.mubr.msk.bf16.vlgmr.msra.gmra.mrb[52].mxu0 %vm2898_vm2, %v2857_v58 }
 0x599   :  { %v3004_v50 = vpop.f32.mrb[104].mxu1 }
 0x59a   :  { %v4915_v56 = vpop.f32.mrb[105].mxu1 }
 0x59b   :  { %v3007_v44 = vpop.f32.mrb[106].mxu1 }
 0x59c   :  { %v4916_v31 = vpop.f32.mrb[107].mxu1 }
 0x5a1   :  { %v2936_v36 = vpop.f32.mrb[36].mxu0 }
 0x5a2   :  { %v3005_v55 = vadd.f32 %v3004_v50, %v2936_v36  ;;  %v4903_v34 = vpop.f32.mrb[37].mxu0 }
 0x5a3   :  { %v2939_v48 = vpop.f32.mrb[38].mxu0 }
 0x5a4   :  { %v3008_v52 = vadd.f32 %v3007_v44, %v2939_v48  ;;  %v4904_v40 = vpop.f32.mrb[39].mxu0 }
 0x5b1   :  { %v3080_v57 = vpop.f32.mrb[40].mxu0  ;;  %v3158_v33 = vpop.f32.mrb[108].mxu1 }
 0x5b2   :  { %v3087_v32 = vadd.f32 %v3080_v57, %v3005_v55  ;;  %v4927_v41 = vpop.f32.mrb[41].mxu0  ;;  %v4939_v42 = vpop.f32.mrb[109].mxu1 }
 0x5b3   :  { %v3083_v49 = vpop.f32.mrb[42].mxu0  ;;  %v3161_v39 = vpop.f32.mrb[110].mxu1 }
 0x5b4   :  { %v3088_v60 = vadd.f32 %v3083_v49, %v3008_v52  ;;  %v3165_v47 = vadd.f32 %v3158_v33, %v3087_v32  ;;  %v4928_v35 = vpop.f32.mrb[43].mxu0  ;;  %v4940_v59 = vpop.f32.mrb[111].mxu1 }
 0x5b6   :  { %v3166_v58 = vadd.f32 %v3161_v39, %v3088_v60 }
 0x5c1   :  { %v3236_v51 = vpop.f32.mrb[44].mxu0  ;;  %v3314_v43 = vpop.f32.mrb[112].mxu1 }
 0x5c2   :  { %v3243_v56 = vadd.f32 %v3236_v51, %v3165_v47  ;;  %v4951_v50 = vpop.f32.mrb[45].mxu0  ;;  %v4963_v31 = vpop.f32.mrb[113].mxu1 }
 0x5c3   :  { %v3239_v36 = vpop.f32.mrb[46].mxu0  ;;  %v3317_v44 = vpop.f32.mrb[114].mxu1 }
 0x5c4   :  { %v3244_v34 = vadd.f32 %v3239_v36, %v3166_v58  ;;  %v3321_v48 = vadd.f32 %v3314_v43, %v3243_v56  ;;  %v4952_v40 = vpop.f32.mrb[47].mxu0  ;;  %v4964_v55 = vpop.f32.mrb[115].mxu1  ;;  %v4325_v58 = vld [vmem:[%s6505_s8] ss:$0 sm:$0xff] }
 0x5c6   :  { %v3322_v57 = vadd.f32 %v3317_v44, %v3244_v34 }
 0x5d1   :  { %v3392_v41 = vpop.f32.mrb[48].mxu0  ;;  %v3470_v42 = vpop.f32.mrb[116].mxu1 }
 0x5d2   :  { %v3399_v46 = vadd.f32 %v3392_v41, %v3321_v48  ;;  %v4975_v52 = vpop.f32.mrb[49].mxu0  ;;  %v4987_v33 = vpop.f32.mrb[117].mxu1 }
 0x5d3   :  { %v3395_v32 = vpop.f32.mrb[50].mxu0  ;;  %v3473_v49 = vpop.f32.mrb[118].mxu1 }
 0x5d4   :  { %v3400_v39 = vadd.f32 %v3395_v32, %v3322_v57  ;;  %v3477_v60 = vadd.f32 %v3470_v42, %v3399_v46  ;;  %v4976_v35 = vpop.f32.mrb[51].mxu0  ;;  %v4988_v47 = vpop.f32.mrb[119].mxu1 }
 0x5d6   :  { %v3478_v59 = vadd.f32 %v3473_v49, %v3400_v39 }
 0x5e1   :  { %v3548_v51 = vpop.f32.mrb[52].mxu0 }
 0x5e2   :  { %v3555_v43 = vadd.f32 %v3548_v51, %v3477_v60  ;;  %v4999_v56 = vpop.f32.mrb[53].mxu0 }
 0x5e3   :  { %v3551_v50 = vpop.f32.mrb[54].mxu0 }
 0x5e4   :  { %v3564_v31 = vadd.f32 %v4325_v58, %v3555_v43  ;;  %v3556_v36 = vadd.f32 %v3551_v50, %v3478_v59  ;;  %v5000_v44 = vpop.f32.mrb[55].mxu0 }
 0x5e6   :  { %v3565_v34 = vadd.f32 %v4325_v58, %v3556_v36  ;;  %v3566_v48 = vmax.f32 %v3564_v31, 0.0 }
 0x5e8   :  { %v3567_v40 = vmax.f32 %v3565_v34, 0.0 }
 0x5ea   :  { %v6393_v55 = vpack.c.bf16 %v3567_v40, %v3566_v48 }
 0x5eb   :  { %5236 = dma.done.wait [#allocation4], 4096 }
 0x5ec   :  { %5237 = vsyncadd [#allocation4], 4294963200  ;;  %v5244_v46 = vmov 0   ;;  %v3574_v57 = vld [vmem:[#allocation2 + $0x8] sm:$0xff]  ;;  %v3576_v41 = vld [vmem:[#allocation2 + $0x18] sm:$0xff] }
 0x5ed   :  { %3682 = vmatprep.mubr.bf16.mxu1 %v5244_v46  ;;  %3725 = vmatprep.mubr.bf16.mxu0 %v5244_v46  ;;  %v3573_v42 = vld [vmem:[#allocation2] sm:$0xff]  ;;  %v3575_v52 = vld [vmem:[#allocation2 + $0x10] sm:$0xff]  ;;  %v3582_v33 = vld [vmem:[#allocation2 + $0x48] sm:$0xff] }
 0x5ee   :  { %3650 = vmatprep.subr.bf16.mxu1 %v3574_v57  ;;  %3693 = vmatprep.subr.bf16.mxu0 %v3576_v41  ;;  %v3584_v32 = vld [vmem:[#allocation2 + $0x58] sm:$0xff]  ;;  %v3581_v49 = vld [vmem:[#allocation2 + $0x40] sm:$0xff]  ;;  %v3583_v39 = vld [vmem:[#allocation2 + $0x50] sm:$0xff] }
 0x5ef   :  { %3651 = vmatpush1.bf16.msra.mxu1 %v3573_v42  ;;  %3694 = vmatpush1.bf16.msra.mxu0 %v3575_v52  ;;  %v3590_v60 = vld [vmem:[#allocation2 + $0x88] sm:$0xff]  ;;  %v3592_v35 = vld [vmem:[#allocation2 + $0x98] sm:$0xff]  ;;  %v3589_v47 = vld [vmem:[#allocation2 + $0x80] sm:$0xff] }
 0x5f0   :  { %3652 = vmatprep.subr.bf16.mxu1 %v3582_v33  ;;  %3695 = vmatprep.subr.bf16.mxu0 %v3584_v32  ;;  %v3591_v59 = vld [vmem:[#allocation2 + $0x90] sm:$0xff]  ;;  %v3598_v51 = vld [vmem:[#allocation2 + $0xc8] sm:$0xff]  ;;  %v3600_v58 = vld [vmem:[#allocation2 + $0xd8] sm:$0xff] }
 0x5f1   :  { %v3597_v43 = vld [vmem:[#allocation2 + $0xc0] sm:$0xff]  ;;  %v3599_v56 = vld [vmem:[#allocation2 + $0xd0] sm:$0xff]  ;;  %v3578_v50 = vld [vmem:[#allocation2 + $0x28] sm:$0xff] }
 0x5f2   :  { %v3580_v31 = vld [vmem:[#allocation2 + $0x38] sm:$0xff]  ;;  %v3577_v36 = vld [vmem:[#allocation2 + $0x20] sm:$0xff]  ;;  %v3579_v44 = vld [vmem:[#allocation2 + $0x30] sm:$0xff] }
 0x5f3   :  { %3653 = vmatpush1.bf16.msra.mxu1 %v3581_v49  ;;  %3696 = vmatpush1.bf16.msra.mxu0 %v3583_v39  ;;  %v3586_v34 = vld [vmem:[#allocation2 + $0x68] sm:$0xff]  ;;  %v3588_v48 = vld [vmem:[#allocation2 + $0x78] sm:$0xff]  ;;  %v3585_v40 = vld [vmem:[#allocation2 + $0x60] sm:$0xff] }
 0x5f4   :  { %3654 = vmatprep.subr.bf16.mxu1 %v3590_v60  ;;  %3697 = vmatprep.subr.bf16.mxu0 %v3592_v35  ;;  %v3587_v57 = vld [vmem:[#allocation2 + $0x70] sm:$0xff]  ;;  %v3594_v41 = vld [vmem:[#allocation2 + $0xa8] sm:$0xff]  ;;  %v3596_v42 = vld [vmem:[#allocation2 + $0xb8] sm:$0xff] }
 0x5f5   :  { %v3593_v52 = vld [vmem:[#allocation2 + $0xa0] sm:$0xff]  ;;  %v3595_v33 = vld [vmem:[#allocation2 + $0xb0] sm:$0xff]  ;;  %v3602_v32 = vld [vmem:[#allocation2 + $0xe8] sm:$0xff] }
 0x5f6   :  { %v3604_v49 = vld [vmem:[#allocation2 + $0xf8] sm:$0xff]  ;;  %v3601_v39 = vld [vmem:[#allocation2 + $0xe0] sm:$0xff]  ;;  %v3603_v60 = vld [vmem:[#allocation2 + $0xf0] sm:$0xff] }
 0x5f7   :  { %3655 = vmatpush1.bf16.msra.mxu1 %v3589_v47  ;;  %3698 = vmatpush1.bf16.msra.mxu0 %v3591_v59 }
 0x5f8   :  { %3656 = vmatprep.subr.bf16.mxu1 %v3598_v51  ;;  %3699 = vmatprep.subr.bf16.mxu0 %v3600_v58  ;;  %v3605_v51 = vld [vmem:[%s6506_s9] sm:$0xff] }
 0x5fb   :  { %3657 = vmatpush1.bf16.msra.mxu1 %v3597_v43  ;;  %3700 = vmatpush1.bf16.msra.mxu0 %v3599_v56 }
 0x5fc   :  { %3736 = vmatprep.subr.bf16.mxu1 %v3578_v50  ;;  %3779 = vmatprep.subr.bf16.mxu0 %v3580_v31 }
 0x5fe   :  { %4326 = vmatmul.mubr.msk.bf16.vlgmr.msra.gmra.mrb[120].mxu1 %vm2898_vm2, %v6393_v55  ;;  %4327 = vmatmul.mubr.msk.bf16.vlgmr.msra.gmra.mrb[56].mxu0 %vm2898_vm2, %v6393_v55 }
 0x5ff   :  { %3737 = vmatpush1.bf16.msra.mxu1 %v3577_v36  ;;  %3780 = vmatpush1.bf16.msra.mxu0 %v3579_v44 }
 0x600   :  { %3738 = vmatprep.subr.bf16.mxu1 %v3586_v34  ;;  %3781 = vmatprep.subr.bf16.mxu0 %v3588_v48 }
 0x601   :  { %3768 = vmatprep.mubr.bf16.mxu1 %v5244_v46  ;;  %3811 = vmatprep.mubr.bf16.mxu0 %v5244_v46  ;;  %v3607_v46 = vlaneseq }
 0x603   :  { %3739 = vmatpush1.bf16.msra.mxu1 %v3585_v40  ;;  %3782 = vmatpush1.bf16.msra.mxu0 %v3587_v57  ;;  %v3608_v35 = vshrl.u32 %v3607_v46, 7 }
 0x604   :  { %3740 = vmatprep.subr.bf16.mxu1 %v3594_v41  ;;  %3783 = vmatprep.subr.bf16.mxu0 %v3596_v42 }
 0x605   :  { %v3609_v47 = vsub.s32 0, %v3608_v35  ;;  %v3617_v59 = vsub.s32 2, %v3608_v35  ;;  %v3613_v58 = vsub.s32 1, %v3608_v35  ;;  %v3621_v43 = vsub.s32 3, %v3608_v35 }
 0x607   :  { %3741 = vmatpush1.bf16.msra.mxu1 %v3593_v52  ;;  %3784 = vmatpush1.bf16.msra.mxu0 %v3595_v33  ;;  %v3610_v56 = vrot.slane %v3605_v51, %v3609_v47  ;;  %v3618_v50 = vrot.slane %v3605_v51, %v3617_v59  ;;  %v3614_v31 = vrot.slane %v3605_v51, %v3613_v58 }
 0x608   :  { %3742 = vmatprep.subr.bf16.mxu1 %v3602_v32  ;;  %3785 = vmatprep.subr.bf16.mxu0 %v3604_v49  ;;  %v3622_v36 = vrot.slane %v3605_v51, %v3621_v43 }
 0x60b   :  { %3743 = vmatpush1.bf16.msra.mxu1 %v3601_v39  ;;  %3786 = vmatpush1.bf16.msra.mxu0 %v3603_v60 }
 0x60c   :  { %4557 = vmatprep.subr.bf16.mxu1 %v5542_v5  ;;  %4579 = vmatprep.subr.bf16.mxu0 %v5622_v21 }
 0x60e   :  { %4328 = vmatmul.mubr.msk.bf16.vlgmr.msra.gmra.mrb[124].mxu1 %vm2898_vm2, %v6393_v55  ;;  %4329 = vmatmul.mubr.msk.bf16.vlgmr.msra.gmra.mrb[60].mxu0 %vm2898_vm2, %v6393_v55 }
 0x6d1   :  { %v3684_v44 = vpop.f32.mrb[120].mxu1  ;;  %v3727_v34 = vpop.f32.mrb[56].mxu0 }
 0x6d2   :  { %v3685_v48 = vadd.f32 %v3684_v44, %v3610_v56  ;;  %v3728_v40 = vadd.f32 %v3727_v34, %v3618_v50  ;;  %v3686_v57 = vpop.f32.mrb[121].mxu1  ;;  %v3729_v55 = vpop.f32.mrb[57].mxu0 }
 0x6d3   :  { %v3687_v41 = vadd.f32 %v3686_v57, %v3614_v31  ;;  %v3730_v42 = vadd.f32 %v3729_v55, %v3622_v36  ;;  %v3688_v52 = vpop.f32.mrb[122].mxu1  ;;  %v3731_v33 = vpop.f32.mrb[58].mxu0 }
 0x6d4   :  { %v3822_v32 = vmax.f32 %v3685_v48, 0.0  ;;  %v3824_v49 = vmax.f32 %v3728_v40, 0.0  ;;  %v3689_v39 = vadd.f32 %v3688_v52, %v3610_v56  ;;  %v3732_v60 = vadd.f32 %v3731_v33, %v3618_v50  ;;  %v3690_v46 = vpop.f32.mrb[123].mxu1  ;;  %v3733_v30 = vpop.f32.mrb[59].mxu0 }
 0x6d5   :  { %v3691_v47 = vadd.f32 %v3690_v46, %v3614_v31  ;;  %v3734_v59 = vadd.f32 %v3733_v30, %v3622_v36  ;;  %v3823_v54 = vmax.f32 %v3687_v41, 0.0  ;;  %v3825_v38 = vmax.f32 %v3730_v42, 0.0 }
 0x6d6   :  { %v3830_v58 = vmax.f32 %v3689_v39, 0.0  ;;  %v3832_v43 = vmax.f32 %v3732_v60, 0.0  ;;  %v3625_v48 = vsub.s32 4, %v3608_v35  ;;  %v3633_v40 = vsub.s32 6, %v3608_v35 }
 0x6d7   :  { %v3831_v44 = vmax.f32 %v3691_v47, 0.0  ;;  %v3833_v34 = vmax.f32 %v3734_v59, 0.0  ;;  %v3629_v56 = vsub.s32 5, %v3608_v35  ;;  %v3637_v50 = vsub.s32 7, %v3608_v35 }
 0x6d8   :  { %v6406_v45 = vpack.c.bf16 %v3830_v58, %v3822_v32  ;;  %v6408_v57 = vpack.c.bf16 %v3832_v43, %v3824_v49  ;;  %v3626_v52 = vrot.slane %v3605_v51, %v3625_v48  ;;  %v3634_v33 = vrot.slane %v3605_v51, %v3633_v40 }
 0x6d9   :  { %v3839_v55 = vpack.c.bf16 %v3831_v44, %v3823_v54  ;;  %v3841_v29 = vpack.c.bf16 %v3833_v34, %v3825_v38  ;;  %v3630_v31 = vrot.slane %v3605_v51, %v3629_v56  ;;  %v3638_v30 = vrot.slane %v3605_v51, %v3637_v50 }
 0x6da   :  { %6544 = vst [vmem:[#allocation42_spill] sm:$0xff] %v6406_v45  ;;  %6545 = vst [vmem:[#allocation43_spill] sm:$0xff] %v6408_v57 }
 0x6e1   :  { %v3770_v36 = vpop.f32.mrb[124].mxu1  ;;  %v3813_v39 = vpop.f32.mrb[60].mxu0 }
 0x6e2   :  { %v3771_v41 = vadd.f32 %v3770_v36, %v3626_v52  ;;  %v3814_v42 = vadd.f32 %v3813_v39, %v3634_v33  ;;  %v3772_v60 = vpop.f32.mrb[125].mxu1  ;;  %v3815_v46 = vpop.f32.mrb[61].mxu0 }
 0x6e3   :  { %v3773_v32 = vadd.f32 %v3772_v60, %v3630_v31  ;;  %v3816_v47 = vadd.f32 %v3815_v46, %v3638_v30  ;;  %v3774_v49 = vpop.f32.mrb[126].mxu1  ;;  %v3817_v59 = vpop.f32.mrb[62].mxu0 }
 0x6e4   :  { %v3775_v54 = vadd.f32 %v3774_v49, %v3626_v52  ;;  %v3818_v38 = vadd.f32 %v3817_v59, %v3634_v33  ;;  %v3776_v58 = vpop.f32.mrb[127].mxu1  ;;  %v3819_v43 = vpop.f32.mrb[63].mxu0  ;;  %v3826_v34 = vmax.f32 %v3771_v41, 0.0  ;;  %v3828_v48 = vmax.f32 %v3814_v42, 0.0 }
 0x6e5   :  { %v3777_v44 = vadd.f32 %v3776_v58, %v3630_v31  ;;  %v3820_v35 = vadd.f32 %v3819_v43, %v3638_v30  ;;  %v3827_v56 = vmax.f32 %v3773_v32, 0.0  ;;  %v3829_v50 = vmax.f32 %v3816_v47, 0.0 }
 0x6e6   :  { %v3834_v40 = vmax.f32 %v3775_v54, 0.0  ;;  %v3836_v51 = vmax.f32 %v3818_v38, 0.0 }
 0x6e7   :  { %v3835_v36 = vmax.f32 %v3777_v44, 0.0  ;;  %v3837_v39 = vmax.f32 %v3820_v35, 0.0 }
 0x6e8   :  { %v6410_v57 = vpack.c.bf16 %v3834_v40, %v3826_v34  ;;  %v6412_v60 = vpack.c.bf16 %v3836_v51, %v3828_v48 }
 0x6e9   :  { %v3843_v46 = vpack.c.bf16 %v3835_v36, %v3827_v56  ;;  %v3845_v45 = vpack.c.bf16 %v3837_v39, %v3829_v50 }
 0x6ea   :  { %5238 = dma.done.wait [#allocation4 + $0x1], 8192 }
 0x6eb   :  { %5239 = vsyncadd [#allocation4 + $0x1], 4294959104  ;;  %4558 = vmatpush3.bf16.msra.mxu1 %v5502_v61  ;;  %4580 = vmatpush3.bf16.msra.mxu0 %v5582_v13  ;;  %v6546_v61 = vld [vmem:[#allocation42_spill] sm:$0xff]  ;;  %v6554_v5 = vld [vmem:[#allocation21_spill] sm:$0xff]  ;;  %vm4081_vm3 = vcmask 41984  }
 0x6ec   :  { %4559 = vmatprep.subr.bf16.mxu1 %v5547_v6  ;;  %4581 = vmatprep.subr.bf16.mxu0 %v5627_v22  ;;  %v6555_v6 = vld [vmem:[#allocation36_spill] sm:$0xff]  ;;  %v6562_v13 = vld [vmem:[#allocation23_spill] sm:$0xff]  ;;  %v6570_v21 = vld [vmem:[#allocation25_spill] sm:$0xff] }
 0x6ed   :  { %3953 = vmatprep.mubr.bf16.mxu1 %v3839_v55  ;;  %3993 = vmatprep.mubr.bf16.mxu0 %v3841_v29  ;;  %v6571_v22 = vld [vmem:[#allocation40_spill] sm:$0xff] }
 0x6ef   :  { %4560 = vmatpush3.bf16.msra.mxu1 %v5507_v62  ;;  %4582 = vmatpush3.bf16.msra.mxu0 %v5587_v14  ;;  %v6547_v62 = vld [vmem:[#allocation43_spill] sm:$0xff]  ;;  %v6563_v14 = vld [vmem:[#allocation38_spill] sm:$0xff] }
 0x6f0   :  { %4561 = vmatprep.subr.bf16.mxu1 %v5552_v7  ;;  %4583 = vmatprep.subr.bf16.mxu0 %v5632_v23  ;;  %v6556_v7 = vld [vmem:[#allocation14_spill] sm:$0xff] }
 0x6f1   :  { %v6572_v23 = vld [vmem:[#allocation18_spill] sm:$0xff] }
 0x6f3   :  { %4562 = vmatpush3.bf16.msra.mxu1 %v5512_v63  ;;  %4584 = vmatpush3.bf16.msra.mxu0 %v5592_v15  ;;  %v6548_v63 = vld [vmem:[#allocation12_spill] sm:$0xff] }
 0x6f4   :  { %4563 = vmatprep.subr.bf16.mxu1 %v5557_v8  ;;  %4585 = vmatprep.subr.bf16.mxu0 %v5637_v24  ;;  %v6557_v8 = vld [vmem:[#allocation29_spill] sm:$0xff]  ;;  %v6564_v15 = vld [vmem:[#allocation16_spill] sm:$0xff] }
 0x6f5   :  { %v6573_v24 = vld [vmem:[#allocation33_spill] sm:$0xff] }
 0x6f7   :  { %4564 = vmatpush3.bf16.msra.mxu1 %v5517_v0  ;;  %4586 = vmatpush3.bf16.msra.mxu0 %v5597_v16  ;;  %v6549_v0 = vld [vmem:[#allocation27_spill] sm:$0xff] }
 0x6f8   :  { %4565 = vmatprep.subr.bf16.mxu1 %v5562_v9  ;;  %4587 = vmatprep.subr.bf16.mxu0 %v5642_v25  ;;  %v6558_v9 = vld [vmem:[#allocation22_spill] sm:$0xff]  ;;  %v6565_v16 = vld [vmem:[#allocation31_spill] sm:$0xff] }
 0x6f9   :  { %v6574_v25 = vld [vmem:[#allocation26_spill] sm:$0xff] }
 0x6fb   :  { %4566 = vmatpush3.bf16.msra.mxu1 %v5522_v1  ;;  %4588 = vmatpush3.bf16.msra.mxu0 %v5602_v17  ;;  %v6550_v1 = vld [vmem:[#allocation20_spill] sm:$0xff] }
 0x6fc   :  { %4567 = vmatprep.subr.bf16.mxu1 %v5567_v10  ;;  %4589 = vmatprep.subr.bf16.mxu0 %v5647_v26  ;;  %v6559_v10 = vld [vmem:[#allocation37_spill] sm:$0xff]  ;;  %v6566_v17 = vld [vmem:[#allocation24_spill] sm:$0xff] }
 0x6fd   :  { %v6575_v26 = vld [vmem:[#allocation41_spill] sm:$0xff] }
 0x6ff   :  { %4568 = vmatpush3.bf16.msra.mxu1 %v5527_v2  ;;  %4590 = vmatpush3.bf16.msra.mxu0 %v5607_v18  ;;  %v6551_v2 = vld [vmem:[#allocation35_spill] sm:$0xff] }
 0x700   :  { %4569 = vmatprep.subr.bf16.mxu1 %v5572_v11  ;;  %4591 = vmatprep.subr.bf16.mxu0 %v5652_v27  ;;  %v6560_v11 = vld [vmem:[#allocation15_spill] sm:$0xff] }
 0x701   :  { %v6567_v18 = vld [vmem:[#allocation39_spill] sm:$0xff] }
 0x702   :  { %v6576_v27 = vld [vmem:[#allocation19_spill] sm:$0xff] }
 0x703   :  { %4570 = vmatpush3.bf16.msra.mxu1 %v5532_v3  ;;  %4592 = vmatpush3.bf16.msra.mxu0 %v5612_v19  ;;  %v6552_v3 = vld [vmem:[#allocation13_spill] sm:$0xff] }
 0x704   :  { %4571 = vmatprep.subr.bf16.mxu1 %v5577_v12  ;;  %4593 = vmatprep.subr.bf16.mxu0 %v5657_v28  ;;  %v6561_v12 = vld [vmem:[#allocation30_spill] sm:$0xff]  ;;  %v6568_v19 = vld [vmem:[#allocation17_spill] sm:$0xff] }
 0x705   :  { %v6577_v28 = vld [vmem:[#allocation34_spill] sm:$0xff] }
 0x707   :  { %4572 = vmatpush3.bf16.msra.mxu1 %v5537_v4  ;;  %4594 = vmatpush3.bf16.msra.mxu0 %v5617_v20  ;;  %v6553_v4 = vld [vmem:[#allocation28_spill] sm:$0xff] }
 0x708   :  { %4601 = vmatprep.subr.bf16.mxu1 %v5702_v37  ;;  %4623 = vmatprep.subr.bf16.mxu0 %v5782_v53  ;;  %v6569_v20 = vld [vmem:[#allocation32_spill] sm:$0xff] }
 0x70a   :  { %3954 = vmatmul.mubr.bf16.vlgmr.msra.gmra.mrb[128].mxu1 %v6546_v61  ;;  %3994 = vmatmul.mubr.bf16.vlgmr.msra.gmra.mrb[64].mxu0 %v6547_v62 }
 0x70b   :  { %4602 = vmatpush3.bf16.msra.mxu1 %v6548_v63  ;;  %4624 = vmatpush3.bf16.msra.mxu0 %v6549_v0 }
 0x70c   :  { %4603 = vmatprep.subr.bf16.mxu1 %v6550_v1  ;;  %4625 = vmatprep.subr.bf16.mxu0 %v6551_v2 }
 0x70d   :  { %4033 = vmatprep.mubr.bf16.mxu1 %v3843_v46  ;;  %4073 = vmatprep.mubr.bf16.mxu0 %v3845_v45  ;;  %v4330_v45 = vld [vmem:[%s6507_s10] ss:$0 sm:$0xff]  ;;  %s5245_s10 = smov [#allocation5]  }
 0x70e   :  { %s4089_s24 = sshll.u32 %s5245_s10, 4  ;;  %s4090_s24 = int_to_ptr.vmem [resolvable:$true] %s4089_s24 }
 0x70f   :  { %4604 = vmatpush3.bf16.msra.mxu1 %v6552_v3  ;;  %4626 = vmatpush3.bf16.msra.mxu0 %v6553_v4  ;;  %s5214_s25 = scalar_lea.vmem %s4090_s24, 32  ;;  %p5219_p1 = scmp.lt.s32.totalorder %s4090_s24, %s4090_s24 }
 0x710   :  { %4605 = vmatprep.subr.bf16.mxu1 %v6554_v5  ;;  %4627 = vmatprep.subr.bf16.mxu0 %v6555_v6  ;;  %p5215_p0 = scmp.ne.s32.totalorder %s4090_s24, %s5214_s25  ;;  %p5220_p2 = scmp.lt.s32.totalorder %s5214_s25, %s5214_s25 }
 0x712   :  { %p5221_p3 = por %p5220_p2, %p5219_p1 }
 0x713   :  { %4606 = vmatpush3.bf16.msra.mxu1 %v6556_v7  ;;  %4628 = vmatpush3.bf16.msra.mxu0 %v6557_v8 }
 0x714   :  { %4607 = vmatprep.subr.bf16.mxu1 %v6558_v9  ;;  %4629 = vmatprep.subr.bf16.mxu0 %v6559_v10  ;;  %p5222_p4 = pnand %p5221_p3, %p5215_p0 }
 0x717   :  { %4608 = vmatpush3.bf16.msra.mxu1 %v6560_v11  ;;  %4630 = vmatpush3.bf16.msra.mxu0 %v6561_v12 }
 0x718   :  { %4609 = vmatprep.subr.bf16.mxu1 %v6562_v13  ;;  %4631 = vmatprep.subr.bf16.mxu0 %v6563_v14 }
 0x71b   :  { %4610 = vmatpush3.bf16.msra.mxu1 %v6564_v15  ;;  %4632 = vmatpush3.bf16.msra.mxu0 %v6565_v16 }
 0x71c   :  { %4611 = vmatprep.subr.bf16.mxu1 %v6566_v17  ;;  %4633 = vmatprep.subr.bf16.mxu0 %v6567_v18 }
 0x71f   :  { %4612 = vmatpush3.bf16.msra.mxu1 %v6568_v19  ;;  %4634 = vmatpush3.bf16.msra.mxu0 %v6569_v20 }
 0x720   :  { %4613 = vmatprep.subr.bf16.mxu1 %v6570_v21  ;;  %4635 = vmatprep.subr.bf16.mxu0 %v6571_v22 }
 0x723   :  { %4614 = vmatpush3.bf16.msra.mxu1 %v6572_v23  ;;  %4636 = vmatpush3.bf16.msra.mxu0 %v6573_v24 }
 0x724   :  { %4615 = vmatprep.subr.bf16.mxu1 %v6574_v25  ;;  %4637 = vmatprep.subr.bf16.mxu0 %v6575_v26 }
 0x727   :  { %4616 = vmatpush3.bf16.msra.mxu1 %v6576_v27  ;;  %4638 = vmatpush3.bf16.msra.mxu0 %v6577_v28 }
 0x72a   :  { %4034 = vmatmul.mubr.bf16.vlgmr.msra.gmra.mrb[132].mxu1 %v6410_v57  ;;  %4074 = vmatmul.mubr.bf16.vlgmr.msra.gmra.mrb[68].mxu0 %v6412_v60 }
 0x7dd   :  { %v4573_v29 = vpop.f32.mrb[128].mxu1  ;;  %v4595_v37 = vpop.f32.mrb[64].mxu0 }
 0x7de   :  { %v4574_v53 = vpop.f32.mrb[129].mxu1  ;;  %v4596_v55 = vpop.f32.mrb[65].mxu0 }
 0x7df   :  { %v4575_v52 = vadd.f32 %v4574_v53, %v4573_v29  ;;  %v4597_v33 = vadd.f32 %v4596_v55, %v4595_v37  ;;  %v4576_v31 = vpop.f32.mrb[130].mxu1  ;;  %v4598_v30 = vpop.f32.mrb[66].mxu0 }
 0x7e0   :  { %v4577_v41 = vpop.f32.mrb[131].mxu1  ;;  %v4599_v42 = vpop.f32.mrb[67].mxu0 }
 0x7e1   :  { %v3956_v32 = vadd.f32 %v4575_v52, %v4330_v45 }
 0x7e3   :  { %v3996_v47 = vadd.f32 %v4597_v33, %v3956_v32 }
 0x7fd   :  { %v4617_v49 = vpop.f32.mrb[132].mxu1  ;;  %v4639_v57 = vpop.f32.mrb[68].mxu0 }
 0x7fe   :  { %v4618_v59 = vpop.f32.mrb[133].mxu1  ;;  %v4640_v54 = vpop.f32.mrb[69].mxu0 }
 0x7ff   :  { %v4619_v38 = vadd.f32 %v4618_v59, %v4617_v49  ;;  %v4641_v58 = vadd.f32 %v4640_v54, %v4639_v57  ;;  %v4620_v43 = vpop.f32.mrb[134].mxu1  ;;  %v4642_v44 = vpop.f32.mrb[70].mxu0 }
 0x800   :  { %v4621_v35 = vpop.f32.mrb[135].mxu1  ;;  %v4643_v34 = vpop.f32.mrb[71].mxu0 }
 0x801   :  { %v4036_v48 = vadd.f32 %v4619_v38, %v3996_v47 }
 0x803   :  { %v4076_v40 = vadd.f32 %v4641_v58, %v4036_v48 }
 0x805   :  { %4082 = vst.msk [vmem:[#allocation5] sm:$0x3] %vm4081_vm3, %v4076_v40 }
 0x806   :  { %5225 = shalt.err (!%p5222_p4)
}
 0x807   :  { %s5226_s27 = scalar_lea.hbm %s6510_s13, 32 }
 0x808   :  { %p5227_p5 = scmp.ne.s32.totalorder %s6510_s13, %s5226_s27  ;;  %p5230_p6 = scmp.lt.u32.totalorder %s5226_s27, %s6510_s13 }
 0x80a   :  { %p5232_p7 = pnand %p5230_p6, %p5227_p5 }
 0x80c   :  { %5235 = shalt.err (!%p5232_p7)
}
 0x80d   :  { %4092 = dma.vmem_to_hbm [thread:$0]  %s4090_s24, 32, %s6510_s13, [#allocation6]  }
 0x80e   :  { %5240 = dma.done.wait [#allocation6], 32  }
 0x80f   :  { %5241 = vsyncadd [#allocation6], 4294967264 }
 0x810   :  { %4096 = vsyncpa [#allocation6], 1 }
 0x811   :  { %4097 = vsyncmov [#allocation4] }
 0x814   :  { %s4098_s16 = vpop.sfrf %4097 }
 0x815   :  { %p4331_p8 = scmp.ne.s32.totalorder %s4098_s16, 0 }
 0x817   :  { %4102 = shalt.err (%p4331_p8)  }
 0x818   :  { %4104 = vsyncmov [#allocation4 + $0x1] }
 0x81b   :  { %s4105_s5 = vpop.sfrf %4104 }
 0x81c   :  { %p4332_p9 = scmp.ne.s32.totalorder %s4105_s5, 0 }
 0x81e   :  { %4109 = shalt.err (%p4332_p9)  }

</bundles_post_ra>
